<compile_context>
chip_gen: v7x
topology: tpu7x:2x2x1
jax: 0.10.0
libtpu: 0.0.40
codegen_flags: <defaults>
</compile_context>

<pallas_src>
import functools

import jax
import jax.numpy as jnp
import numpy as np
from jax.experimental import pallas as pl
from jax.experimental.pallas import tpu as pltpu

SELU_ALPHA = 1.6732632423543772848170429916717
SELU_SCALE = 1.0507009873554804934193349852946


def _selu(x):
    return SELU_SCALE * jnp.where(x > 0, x, SELU_ALPHA * (jnp.exp(x) - 1.0))


def encoder_b2_kernel(x_ref, eps_ref,
                      w1_ref, b1_ref, w2_ref, b2_ref, w3_ref, b3_ref,
                      wm_ref, bm_ref, wv_ref, bv_ref,
                      qm_ref, qv_ref, lat_ref):
    # ---- FC stack, batched over the whole batch tile (bf16 operands, fp32 acc) ----
    x = x_ref[...].astype(jnp.bfloat16)
    h1 = _selu(jnp.dot(x, w1_ref[...],
                       preferred_element_type=jnp.float32) + b1_ref[...])
    h2 = _selu(jnp.dot(h1.astype(jnp.bfloat16), w2_ref[...],
                       preferred_element_type=jnp.float32) + b2_ref[...])
    q = _selu(jnp.dot(h2.astype(jnp.bfloat16), w3_ref[...],
                      preferred_element_type=jnp.float32) + b3_ref[...])

    # ---- mean / variance heads (tiny, keep fp32) + reparameterized sample ----
    qm = jnp.dot(q, wm_ref[...], preferred_element_type=jnp.float32) + bm_ref[...]
    qv_lin = jnp.dot(q, wv_ref[...], preferred_element_type=jnp.float32) + bv_ref[...]
    qv = jnp.exp(jnp.clip(qv_lin, -17.0, 10.0))

    # Full-tile stores (one per output).
    qm_ref[...] = qm
    qv_ref[...] = qv
    lat_ref[...] = qm + jnp.sqrt(qv) * eps_ref[...]


def encoder_b2_forward(x, params, eps, *, batch_tile=None):
    """x: (B, n_input) f32, eps: (B, n_output) standard-normal noise."""
    B, n_input = x.shape
    n_output = params["wm"].shape[1]

    # Pick a batch tile: split large batches so the grid can shard across
    # v7x's two TensorCores; keep a single tile for tiny batches.
    if batch_tile is None:
        if B >= 256:
            batch_tile = 128
        elif B % 16 == 0:
            batch_tile = B // 2
        else:
            batch_tile = B
    tb = batch_tile
    bp = ((B + tb - 1) // tb) * tb
    if bp != B:
        pad = bp - B
        x = jnp.pad(x, ((0, pad), (0, 0)))
        eps = jnp.pad(eps, ((0, pad), (0, 0)))

    # bf16 copies of the big FC weights (accumulation stays fp32 in-kernel).
    w1 = params["w1"].astype(jnp.bfloat16)
    w2 = params["w2"].astype(jnp.bfloat16)
    w3 = params["w3"].astype(jnp.bfloat16)

    weights = (w1, params["b1"], w2, params["b2"], w3, params["b3"],
               params["wm"], params["bm"], params["wv"], params["bv"])

    def const_spec(arr):
        # Whole-array, VMEM-resident block (constant index across the grid).
        return pl.BlockSpec(arr.shape, lambda i: (0, 0))

    def batched(cols):
        return pl.BlockSpec((tb, cols), lambda i: (i, 0))

    grid = (bp // tb,)
    out_shape = tuple(jax.ShapeDtypeStruct((bp, n_output), jnp.float32)
                      for _ in range(3))

    fn = pl.pallas_call(
        encoder_b2_kernel,
        out_shape=out_shape,
        grid=grid,
        in_specs=[batched(n_input), batched(n_output)]
                 + [const_spec(w) for w in weights],
        out_specs=(batched(n_output),) * 3,
        compiler_params=pltpu.CompilerParams(
            dimension_semantics=("parallel",)),
    )
    q_m, q_v, latent = fn(x, eps, *weights)
    if bp != B:
        q_m, q_v, latent = q_m[:B], q_v[:B], latent[:B]

    # TODO(synk): the torch.distributions.Normal object ("dist") cannot be
    # returned from a kernel; q_m / sqrt(q_v) fully parameterize it.
    return dict(q_m=q_m, q_v=q_v, latent=latent, sum_last=True)


def init_params(key, n_input, n_hidden, n_output):
    ks = jax.random.split(key, 10)

    def u(k, shape, fan_in):
        bound = 1.0 / float(np.sqrt(fan_in))
        return jax.random.uniform(k, shape, jnp.float32, -bound, bound)

    return dict(
        w1=u(ks[0], (n_input, 1024), n_input),  b1=u(ks[1], (1, 1024), n_input),
        w2=u(ks[2], (1024, 512), 1024),         b2=u(ks[3], (1, 512), 1024),
        w3=u(ks[4], (512, n_hidden), 512),      b3=u(ks[5], (1, n_hidden), 512),
        wm=u(ks[6], (n_hidden, n_output), n_hidden),
        bm=u(ks[7], (1, n_output), n_hidden),
        wv=u(ks[8], (n_hidden, n_output), n_hidden),
        bv=u(ks[9], (1, n_output), n_hidden),
    )


def reference_forward(x, p, eps):
    """Pure-JAX fp32 reference mirroring the PyTorch forward semantics (eval mode)."""
    h1 = _selu(x @ p["w1"] + p["b1"][0])
    h2 = _selu(h1 @ p["w2"] + p["b2"][0])
    q = _selu(h2 @ p["w3"] + p["b3"][0])
    q_m = q @ p["wm"] + p["bm"][0]
    q_v = jnp.exp(jnp.clip(q @ p["wv"] + p["bv"][0], -17.0, 10.0))
    latent = q_m + jnp.sqrt(q_v) * eps
    return q_m, q_v, latent


if __name__ == "__main__":
    B, n_input, n_hidden, n_output = 8, 64, 32, 16
    key = jax.random.PRNGKey(0)
    kp, kx, ke = jax.random.split(key, 3)

    params = init_params(kp, n_input, n_hidden, n_output)
    x = jax.random.normal(kx, (B, n_input), jnp.float32)
    eps = jax.random.normal(ke, (B, n_output), jnp.float32)  # rsample noise (n_samples=1, squeeze=True)

    out = encoder_b2_forward(x, params, eps)
    jax.block_until_ready(out)

    rm, rv, rl = reference_forward(x, params, eps)
    assert out["q_m"].shape == (B, n_output)
    assert out["q_v"].shape == (B, n_output)
    assert out["latent"].shape == (B, n_output)
    assert bool(jnp.allclose(out["q_m"], rm, rtol=2e-2, atol=2e-2))
    assert bool(jnp.allclose(out["q_v"], rv, rtol=2e-2, atol=2e-2))
    assert bool(jnp.allclose(out["latent"], rl, rtol=2e-2, atol=2e-2))

    print("KERNEL_OK")
</pallas_src>

<mosaic_0001>
module attributes {stable_mosaic.version = 11 : i64} {
  func.func @encoder_b2_kernel(%arg0: i32, %arg1: memref<8x64xf32, #tpu.memory_space<vmem>>, %arg2: memref<8x16xf32, #tpu.memory_space<vmem>>, %arg3: memref<64x1024xbf16, #tpu.memory_space<vmem>>, %arg4: memref<1x1024xf32, #tpu.memory_space<vmem>>, %arg5: memref<1024x512xbf16, #tpu.memory_space<vmem>>, %arg6: memref<1x512xf32, #tpu.memory_space<vmem>>, %arg7: memref<512x32xbf16, #tpu.memory_space<vmem>>, %arg8: memref<1x32xf32, #tpu.memory_space<vmem>>, %arg9: memref<32x16xf32, #tpu.memory_space<vmem>>, %arg10: memref<1x16xf32, #tpu.memory_space<vmem>>, %arg11: memref<32x16xf32, #tpu.memory_space<vmem>>, %arg12: memref<1x16xf32, #tpu.memory_space<vmem>>, %arg13: memref<8x16xf32, #tpu.memory_space<vmem>>, %arg14: memref<8x16xf32, #tpu.memory_space<vmem>>, %arg15: memref<8x16xf32, #tpu.memory_space<vmem>>) attributes {dimension_semantics = [#tpu.dimension_semantics<parallel>], iteration_bounds = array<i64: 1>, scalar_prefetch = 0 : i64, scratch_operands = 0 : i64, tpu.core_type = #tpu.core_type<tc>, window_params = [{transform_indices = @transform_0, window_bounds = array<i64: 8, 64>}, {transform_indices = @transform_1, window_bounds = array<i64: 8, 16>}, {pipeline_mode = #tpu.pipeline_mode<synchronous>, transform_indices = @transform_2, window_bounds = array<i64: 64, 1024>}, {pipeline_mode = #tpu.pipeline_mode<synchronous>, transform_indices = @transform_3, window_bounds = array<i64: 1, 1024>}, {pipeline_mode = #tpu.pipeline_mode<synchronous>, transform_indices = @transform_4, window_bounds = array<i64: 1024, 512>}, {pipeline_mode = #tpu.pipeline_mode<synchronous>, transform_indices = @transform_5, window_bounds = array<i64: 1, 512>}, {pipeline_mode = #tpu.pipeline_mode<synchronous>, transform_indices = @transform_6, window_bounds = array<i64: 512, 32>}, {pipeline_mode = #tpu.pipeline_mode<synchronous>, transform_indices = @transform_7, window_bounds = array<i64: 1, 32>}, {pipeline_mode = #tpu.pipeline_mode<synchronous>, transform_indices = @transform_8, window_bounds = array<i64: 32, 16>}, {pipeline_mode = #tpu.pipeline_mode<synchronous>, transform_indices = @transform_9, window_bounds = array<i64: 1, 16>}, {pipeline_mode = #tpu.pipeline_mode<synchronous>, transform_indices = @transform_10, window_bounds = array<i64: 32, 16>}, {pipeline_mode = #tpu.pipeline_mode<synchronous>, transform_indices = @transform_11, window_bounds = array<i64: 1, 16>}, {transform_indices = @transform_12, window_bounds = array<i64: 8, 16>}, {transform_indices = @transform_13, window_bounds = array<i64: 8, 16>}, {transform_indices = @transform_14, window_bounds = array<i64: 8, 16>}]} {
    %c0 = arith.constant 0 : index
    %c0_0 = arith.constant 0 : index
    %0 = vector.load %arg1[%c0, %c0_0] : memref<8x64xf32, #tpu.memory_space<vmem>>, vector<8x64xf32>
    %1 = arith.truncf %0 : vector<8x64xf32> to vector<8x64xbf16>
    %c0_1 = arith.constant 0 : index
    %c0_2 = arith.constant 0 : index
    %2 = vector.load %arg3[%c0_1, %c0_2] : memref<64x1024xbf16, #tpu.memory_space<vmem>>, vector<64x1024xbf16>
    %cst = arith.constant dense<0.000000e+00> : vector<8x1024xf32>
    %3 = tpu.matmul %1, %2, %cst {dimension_numbers = #tpu.dot_dimension_numbers<[1], [0], [0], [1], [0, 0, 1, 1], [], []>} : vector<8x64xbf16>, vector<64x1024xbf16>, vector<8x1024xf32> -> vector<8x1024xf32>
    %c0_3 = arith.constant 0 : index
    %c0_4 = arith.constant 0 : index
    %4 = vector.load %arg4[%c0_3, %c0_4] : memref<1x1024xf32, #tpu.memory_space<vmem>>, vector<1x1024xf32>
    %5 = vector.broadcast %4 : vector<1x1024xf32> to vector<8x1024xf32>
    %6 = arith.addf %3, %5 : vector<8x1024xf32>
    %cst_5 = arith.constant 0.000000e+00 : f32
    %7 = vector.broadcast %cst_5 : f32 to vector<8x1024xf32>
    %8 = arith.cmpf ogt, %6, %7 : vector<8x1024xf32>
    %9 = math.exp %6 : vector<8x1024xf32>
    %cst_6 = arith.constant 1.000000e+00 : f32
    %10 = vector.broadcast %cst_6 : f32 to vector<8x1024xf32>
    %11 = arith.subf %9, %10 : vector<8x1024xf32>
    %cst_7 = arith.constant 1.67326319 : f32
    %12 = vector.broadcast %cst_7 : f32 to vector<8x1024xf32>
    %13 = arith.mulf %12, %11 : vector<8x1024xf32>
    %14 = arith.select %8, %6, %13 : vector<8x1024xi1>, vector<8x1024xf32>
    %cst_8 = arith.constant 1.05070102 : f32
    %15 = vector.broadcast %cst_8 : f32 to vector<8x1024xf32>
    %16 = arith.mulf %15, %14 : vector<8x1024xf32>
    %17 = arith.truncf %16 : vector<8x1024xf32> to vector<8x1024xbf16>
    %c0_9 = arith.constant 0 : index
    %c0_10 = arith.constant 0 : index
    %18 = vector.load %arg5[%c0_9, %c0_10] : memref<1024x512xbf16, #tpu.memory_space<vmem>>, vector<1024x512xbf16>
    %cst_11 = arith.constant dense<0.000000e+00> : vector<8x512xf32>
    %19 = tpu.matmul %17, %18, %cst_11 {dimension_numbers = #tpu.dot_dimension_numbers<[1], [0], [0], [1], [0, 0, 1, 1], [], []>} : vector<8x1024xbf16>, vector<1024x512xbf16>, vector<8x512xf32> -> vector<8x512xf32>
    %c0_12 = arith.constant 0 : index
    %c0_13 = arith.constant 0 : index
    %20 = vector.load %arg6[%c0_12, %c0_13] : memref<1x512xf32, #tpu.memory_space<vmem>>, vector<1x512xf32>
    %21 = vector.broadcast %20 : vector<1x512xf32> to vector<8x512xf32>
    %22 = arith.addf %19, %21 : vector<8x512xf32>
    %cst_14 = arith.constant 0.000000e+00 : f32
    %23 = vector.broadcast %cst_14 : f32 to vector<8x512xf32>
    %24 = arith.cmpf ogt, %22, %23 : vector<8x512xf32>
    %25 = math.exp %22 : vector<8x512xf32>
    %cst_15 = arith.constant 1.000000e+00 : f32
    %26 = vector.broadcast %cst_15 : f32 to vector<8x512xf32>
    %27 = arith.subf %25, %26 : vector<8x512xf32>
    %cst_16 = arith.constant 1.67326319 : f32
    %28 = vector.broadcast %cst_16 : f32 to vector<8x512xf32>
    %29 = arith.mulf %28, %27 : vector<8x512xf32>
    %30 = arith.select %24, %22, %29 : vector<8x512xi1>, vector<8x512xf32>
    %cst_17 = arith.constant 1.05070102 : f32
    %31 = vector.broadcast %cst_17 : f32 to vector<8x512xf32>
    %32 = arith.mulf %31, %30 : vector<8x512xf32>
    %33 = arith.truncf %32 : vector<8x512xf32> to vector<8x512xbf16>
    %c0_18 = arith.constant 0 : index
    %c0_19 = arith.constant 0 : index
    %34 = vector.load %arg7[%c0_18, %c0_19] : memref<512x32xbf16, #tpu.memory_space<vmem>>, vector<512x32xbf16>
    %cst_20 = arith.constant dense<0.000000e+00> : vector<8x32xf32>
    %35 = tpu.matmul %33, %34, %cst_20 {dimension_numbers = #tpu.dot_dimension_numbers<[1], [0], [0], [1], [0, 0, 1, 1], [], []>} : vector<8x512xbf16>, vector<512x32xbf16>, vector<8x32xf32> -> vector<8x32xf32>
    %c0_21 = arith.constant 0 : index
    %c0_22 = arith.constant 0 : index
    %36 = vector.load %arg8[%c0_21, %c0_22] : memref<1x32xf32, #tpu.memory_space<vmem>>, vector<1x32xf32>
    %37 = vector.broadcast %36 : vector<1x32xf32> to vector<8x32xf32>
    %38 = arith.addf %35, %37 : vector<8x32xf32>
    %cst_23 = arith.constant 0.000000e+00 : f32
    %39 = vector.broadcast %cst_23 : f32 to vector<8x32xf32>
    %40 = arith.cmpf ogt, %38, %39 : vector<8x32xf32>
    %41 = math.exp %38 : vector<8x32xf32>
    %cst_24 = arith.constant 1.000000e+00 : f32
    %42 = vector.broadcast %cst_24 : f32 to vector<8x32xf32>
    %43 = arith.subf %41, %42 : vector<8x32xf32>
    %cst_25 = arith.constant 1.67326319 : f32
    %44 = vector.broadcast %cst_25 : f32 to vector<8x32xf32>
    %45 = arith.mulf %44, %43 : vector<8x32xf32>
    %46 = arith.select %40, %38, %45 : vector<8x32xi1>, vector<8x32xf32>
    %cst_26 = arith.constant 1.05070102 : f32
    %47 = vector.broadcast %cst_26 : f32 to vector<8x32xf32>
    %48 = arith.mulf %47, %46 : vector<8x32xf32>
    %c0_27 = arith.constant 0 : index
    %c0_28 = arith.constant 0 : index
    %49 = vector.load %arg9[%c0_27, %c0_28] : memref<32x16xf32, #tpu.memory_space<vmem>>, vector<32x16xf32>
    %cst_29 = arith.constant dense<0.000000e+00> : vector<8x16xf32>
    %50 = tpu.matmul %48, %49, %cst_29 {dimension_numbers = #tpu.dot_dimension_numbers<[1], [0], [0], [1], [0, 0, 1, 1], [], []>} : vector<8x32xf32>, vector<32x16xf32>, vector<8x16xf32> -> vector<8x16xf32>
    %c0_30 = arith.constant 0 : index
    %c0_31 = arith.constant 0 : index
    %51 = vector.load %arg10[%c0_30, %c0_31] : memref<1x16xf32, #tpu.memory_space<vmem>>, vector<1x16xf32>
    %52 = vector.broadcast %51 : vector<1x16xf32> to vector<8x16xf32>
    %53 = arith.addf %50, %52 : vector<8x16xf32>
    %c0_32 = arith.constant 0 : index
    %c0_33 = arith.constant 0 : index
    %54 = vector.load %arg11[%c0_32, %c0_33] : memref<32x16xf32, #tpu.memory_space<vmem>>, vector<32x16xf32>
    %cst_34 = arith.constant dense<0.000000e+00> : vector<8x16xf32>
    %55 = tpu.matmul %48, %54, %cst_34 {dimension_numbers = #tpu.dot_dimension_numbers<[1], [0], [0], [1], [0, 0, 1, 1], [], []>} : vector<8x32xf32>, vector<32x16xf32>, vector<8x16xf32> -> vector<8x16xf32>
    %c0_35 = arith.constant 0 : index
    %c0_36 = arith.constant 0 : index
    %56 = vector.load %arg12[%c0_35, %c0_36] : memref<1x16xf32, #tpu.memory_space<vmem>>, vector<1x16xf32>
    %57 = vector.broadcast %56 : vector<1x16xf32> to vector<8x16xf32>
    %58 = arith.addf %55, %57 : vector<8x16xf32>
    %cst_37 = arith.constant -1.700000e+01 : f32
    %cst_38 = arith.constant 1.000000e+01 : f32
    %59 = vector.broadcast %cst_37 : f32 to vector<8x16xf32>
    %60 = arith.maximumf %59, %58 : vector<8x16xf32>
    %61 = vector.broadcast %cst_38 : f32 to vector<8x16xf32>
    %62 = arith.minimumf %61, %60 : vector<8x16xf32>
    %63 = math.exp %62 : vector<8x16xf32>
    %c0_39 = arith.constant 0 : index
    %c0_40 = arith.constant 0 : index
    %64 = vector.load %arg13[%c0_39, %c0_40] : memref<8x16xf32, #tpu.memory_space<vmem>>, vector<8x16xf32>
    tpu.vector_store %arg13[%c0_39, %c0_40], %53 {strides = array<i32>} : memref<8x16xf32, #tpu.memory_space<vmem>>, vector<8x16xf32>,
    %c0_41 = arith.constant 0 : index
    %c0_42 = arith.constant 0 : index
    %65 = vector.load %arg14[%c0_41, %c0_42] : memref<8x16xf32, #tpu.memory_space<vmem>>, vector<8x16xf32>
    tpu.vector_store %arg14[%c0_41, %c0_42], %63 {strides = array<i32>} : memref<8x16xf32, #tpu.memory_space<vmem>>, vector<8x16xf32>,
    %66 = math.sqrt %63 : vector<8x16xf32>
    %c0_43 = arith.constant 0 : index
    %c0_44 = arith.constant 0 : index
    %67 = vector.load %arg2[%c0_43, %c0_44] : memref<8x16xf32, #tpu.memory_space<vmem>>, vector<8x16xf32>
    %68 = arith.mulf %66, %67 : vector<8x16xf32>
    %69 = arith.addf %53, %68 : vector<8x16xf32>
    %c0_45 = arith.constant 0 : index
    %c0_46 = arith.constant 0 : index
    %70 = vector.load %arg15[%c0_45, %c0_46] : memref<8x16xf32, #tpu.memory_space<vmem>>, vector<8x16xf32>
    tpu.vector_store %arg15[%c0_45, %c0_46], %69 {strides = array<i32>} : memref<8x16xf32, #tpu.memory_space<vmem>>, vector<8x16xf32>,
    return
  }
  func.func @transform_0(%arg0: i32) -> (i32, i32) {
    %c0_i32 = arith.constant 0 : i32
    %c0_i32_0 = arith.constant 0 : i32
    return %arg0, %c0_i32 : i32, i32
  }
  func.func @transform_1(%arg0: i32) -> (i32, i32) {
    %c0_i32 = arith.constant 0 : i32
    %c0_i32_0 = arith.constant 0 : i32
    return %arg0, %c0_i32 : i32, i32
  }
  func.func @transform_2(%arg0: i32) -> (i32, i32) {
    %c0_i32 = arith.constant 0 : i32
    %c0_i32_0 = arith.constant 0 : i32
    %c0_i32_1 = arith.constant 0 : i32
    return %c0_i32, %c0_i32_0 : i32, i32
  }
  func.func @transform_3(%arg0: i32) -> (i32, i32) {
    %c0_i32 = arith.constant 0 : i32
    %c0_i32_0 = arith.constant 0 : i32
    %c0_i32_1 = arith.constant 0 : i32
    return %c0_i32, %c0_i32_0 : i32, i32
  }
  func.func @transform_4(%arg0: i32) -> (i32, i32) {
    %c0_i32 = arith.constant 0 : i32
    %c0_i32_0 = arith.constant 0 : i32
    %c0_i32_1 = arith.constant 0 : i32
    return %c0_i32, %c0_i32_0 : i32, i32
  }
  func.func @transform_5(%arg0: i32) -> (i32, i32) {
    %c0_i32 = arith.constant 0 : i32
    %c0_i32_0 = arith.constant 0 : i32
    %c0_i32_1 = arith.constant 0 : i32
    return %c0_i32, %c0_i32_0 : i32, i32
  }
  func.func @transform_6(%arg0: i32) -> (i32, i32) {
    %c0_i32 = arith.constant 0 : i32
    %c0_i32_0 = arith.constant 0 : i32
    %c0_i32_1 = arith.constant 0 : i32
    return %c0_i32, %c0_i32_0 : i32, i32
  }
  func.func @transform_7(%arg0: i32) -> (i32, i32) {
    %c0_i32 = arith.constant 0 : i32
    %c0_i32_0 = arith.constant 0 : i32
    %c0_i32_1 = arith.constant 0 : i32
    return %c0_i32, %c0_i32_0 : i32, i32
  }
  func.func @transform_8(%arg0: i32) -> (i32, i32) {
    %c0_i32 = arith.constant 0 : i32
    %c0_i32_0 = arith.constant 0 : i32
    %c0_i32_1 = arith.constant 0 : i32
    return %c0_i32, %c0_i32_0 : i32, i32
  }
  func.func @transform_9(%arg0: i32) -> (i32, i32) {
    %c0_i32 = arith.constant 0 : i32
    %c0_i32_0 = arith.constant 0 : i32
    %c0_i32_1 = arith.constant 0 : i32
    return %c0_i32, %c0_i32_0 : i32, i32
  }
  func.func @transform_10(%arg0: i32) -> (i32, i32) {
    %c0_i32 = arith.constant 0 : i32
    %c0_i32_0 = arith.constant 0 : i32
    %c0_i32_1 = arith.constant 0 : i32
    return %c0_i32, %c0_i32_0 : i32, i32
  }
  func.func @transform_11(%arg0: i32) -> (i32, i32) {
    %c0_i32 = arith.constant 0 : i32
    %c0_i32_0 = arith.constant 0 : i32
    %c0_i32_1 = arith.constant 0 : i32
    return %c0_i32, %c0_i32_0 : i32, i32
  }
  func.func @transform_12(%arg0: i32) -> (i32, i32) {
    %c0_i32 = arith.constant 0 : i32
    %c0_i32_0 = arith.constant 0 : i32
    return %arg0, %c0_i32 : i32, i32
  }
  func.func @transform_13(%arg0: i32) -> (i32, i32) {
    %c0_i32 = arith.constant 0 : i32
    %c0_i32_0 = arith.constant 0 : i32
    return %arg0, %c0_i32 : i32, i32
  }
  func.func @transform_14(%arg0: i32) -> (i32, i32) {
    %c0_i32 = arith.constant 0 : i32
    %c0_i32_0 = arith.constant 0 : i32
    return %arg0, %c0_i32 : i32, i32
  }
}

</mosaic_0001>

<bundles_post_ra>
// kernel: tpu_custom_call.1
= control target key start
LH: loop header
LB: loop body
LE: loop exit
PB: predicated region body
PF: predicated region fallthrough
CT: control target
= control target key end

     0   :  { %20 = vsyncpa [#allocation3], 0  ;;  %s4494_s0 = inlined_call_operand.vmem [shape: f32[8,64], index: 0, kind: input, shape index: {}]   ;;  %s4495_s1 = inlined_call_operand.vmem [shape: f32[8,16], index: 1, kind: input, shape index: {}]   ;;  %s4496_s2 = inlined_call_operand.vmem [shape: bf16[64,1024], index: 2, kind: input, shape index: {}]   ;;  %s4497_s3 = inlined_call_operand.vmem [shape: f32[1,1024], index: 3, kind: input, shape index: {}]   ;;  %s4498_s4 = inlined_call_operand.hbm [shape: bf16[1024,512], index: 4, kind: input, shape index: {}]   ;;  %s4499_s5 = inlined_call_operand.vmem [shape: f32[1,512], index: 5, kind: input, shape index: {}]   ;;  %s4500_s6 = inlined_call_operand.vmem [shape: bf16[512,32], index: 6, kind: input, shape index: {}]   ;;  %s4501_s7 = inlined_call_operand.vmem [shape: f32[1,32], index: 7, kind: input, shape index: {}]   ;;  %s4502_s8 = inlined_call_operand.vmem [shape: f32[32,16], index: 8, kind: input, shape index: {}]   ;;  %s4503_s9 = inlined_call_operand.vmem [shape: f32[1,16], index: 9, kind: input, shape index: {}]   ;;  %s4504_s10 = inlined_call_operand.vmem [shape: f32[32,16], index: 10, kind: input, shape index: {}]   ;;  %s4505_s11 = inlined_call_operand.vmem [shape: f32[1,16], index: 11, kind: input, shape index: {}]   ;;  %s4506_s12 = inlined_call_operand.hbm [shape: f32[8,16], index: 12, kind: output, shape index: {0}]   ;;  %s4507_s13 = inlined_call_operand.hbm [shape: f32[8,16], index: 13, kind: output, shape index: {1}]   ;;  %s4508_s14 = inlined_call_operand.hbm [shape: f32[8,16], index: 14, kind: output, shape index: {2}]  }
   0x1   :  { %21 = vsyncpa [#allocation4], 0 }
   0x2   :  { %22 = vsyncpa [#allocation7], 0  ;;  %s4031_s29 = smov [#allocation2]   ;;  %s3937_s17 = scalar_lea.hbm %s4498_s4, 32768 }
   0x3   :  { %s36_s30 = sshll.u32 %s4031_s29, 4  ;;  %p3938_p0 = scmp.ne.s32.totalorder %s4498_s4, %s3937_s17  ;;  %s37_s30 = int_to_ptr.vmem [resolvable:$true] %s36_s30 }
   0x4   :  { %p3941_p1 = scmp.lt.u32.totalorder %s3937_s17, %s4498_s4 }
   0x6   :  { %p3943_p2 = pnand %p3941_p1, %p3938_p0 }
   0x8   :  { %3946 = shalt.err (!%p3943_p2)
}
   0x9   :  { %s3947_s22 = scalar_lea.vmem %s37_s30, 32768  ;;  %p3952_p4 = scmp.lt.s32.totalorder %s37_s30, %s37_s30 }
   0xa   :  { %p3948_p3 = scmp.ne.s32.totalorder %s37_s30, %s3947_s22  ;;  %p3953_p5 = scmp.lt.s32.totalorder %s3947_s22, %s3947_s22 }
   0xc   :  { %p3954_p6 = por %p3953_p5, %p3952_p4 }
   0xe   :  { %p3955_p7 = pnand %p3954_p6, %p3948_p3 }
  0x10   :  { %3958 = shalt.err (!%p3955_p7)
}
  0x11   :  { %s4032_s23 = smov 256   ;;  %s4033_s24 = smov 16  }
  0x12   :  { %42 = dma.hbm_to_vmem [thread:$0]  %s4498_s4, 32768, %s37_s30, [#allocation3], %s4032_s23, %s4032_s23, %s4033_s24  }
  0x13   :  { %4025 = dma.done.wait [#allocation3], 32768  }
  0x14   :  { %4026 = vsyncadd [#allocation3], 4294934528  ;;  %v4034_v0 = vmov 0   ;;  %v63_v1 = vld [vmem:[%s4496_s2] sm:$0xff]  ;;  %v64_v10 = vld [vmem:[%s4496_s2 + $0x8] sm:$0xff]  ;;  %vm297_vm0 = vcmask 523264  }
  0x15   :  { %333 = vmatprep.mubr.bf16.mxu0 %v4034_v0  ;;  %374 = vmatprep.mubr.bf16.mxu1 %v4034_v0  ;;  %v67_v2 = vld [vmem:[%s4496_s2 + $0x20] sm:$0xff]  ;;  %v68_v11 = vld [vmem:[%s4496_s2 + $0x28] sm:$0xff]  ;;  %v65_v29 = vld [vmem:[%s4496_s2 + $0x10] sm:$0xff]  ;;  %vm4036_vm13 = vmmov 0   ;;  %vm2808_vm15 = vcmask 261120   ;;  %s4038_s26 = smov [#allocation5]  }
  0x16   :  { %v71_v3 = vld [vmem:[%s4496_s2 + $0x40] sm:$0xff]  ;;  %v3024_v4 = vcombine.high %v63_v1, %v67_v2  ;;  %v3023_v5 = vcombine.low %v63_v1, %v67_v2  ;;  %v72_v12 = vld [vmem:[%s4496_s2 + $0x48] sm:$0xff]  ;;  %v3026_v14 = vcombine.high %v64_v10, %v68_v11  ;;  %v3025_v15 = vcombine.low %v64_v10, %v68_v11  ;;  %v69_v30 = vld [vmem:[%s4496_s2 + $0x30] sm:$0xff]  ;;  %s2987_s27 = sshll.u32 %s4038_s26, 4  ;;  %s2988_s27 = int_to_ptr.vmem [resolvable:$true] %s2987_s27 }
  0x17   :  { %v75_v6 = vld [vmem:[%s4496_s2 + $0x60] sm:$0xff]  ;;  %v76_v16 = vld [vmem:[%s4496_s2 + $0x68] sm:$0xff]  ;;  %v3028_v35 = vcombine.high %v65_v29, %v69_v30  ;;  %v73_v36 = vld [vmem:[%s4496_s2 + $0x50] sm:$0xff]  ;;  %v3027_v42 = vcombine.low %v65_v29, %v69_v30  ;;  %s3959_s28 = scalar_lea.vmem %s2988_s27, 128  ;;  %p3964_p9 = scmp.lt.s32.totalorder %s2988_s27, %s2988_s27 }
  0x18   :  { %v3032_v7 = vcombine.high %v71_v3, %v75_v6  ;;  %v79_v8 = vld [vmem:[%s4496_s2 + $0x80] sm:$0xff]  ;;  %301 = vmatprep.subr.bf16.mxu0 %v3024_v4  ;;  %v3031_v13 = vcombine.low %v71_v3, %v75_v6  ;;  %v3034_v18 = vcombine.high %v72_v12, %v76_v16  ;;  %v80_v19 = vld [vmem:[%s4496_s2 + $0x88] sm:$0xff]  ;;  %342 = vmatprep.subr.bf16.mxu1 %v3026_v14  ;;  %v77_v37 = vld [vmem:[%s4496_s2 + $0x70] sm:$0xff]  ;;  %p3960_p8 = scmp.ne.s32.totalorder %s2988_s27, %s3959_s28  ;;  %p3965_p10 = scmp.lt.s32.totalorder %s3959_s28, %s3959_s28 }
  0x19   :  { %v83_v9 = vld [vmem:[%s4496_s2 + $0xa0] sm:$0xff]  ;;  %302 = vmatpush1.bf16.msra.mxu0 %v3023_v5  ;;  %v84_v20 = vld [vmem:[%s4496_s2 + $0xa8] sm:$0xff]  ;;  %343 = vmatpush1.bf16.msra.mxu1 %v3025_v15  ;;  %v3033_v23 = vcombine.low %v72_v12, %v76_v16  ;;  %v66_v38 = vld [vmem:[%s4496_s2 + $0x18] sm:$0xff]  ;;  %v3036_v43 = vcombine.high %v73_v36, %v77_v37  ;;  %v3035_v50 = vcombine.low %v73_v36, %v77_v37 }
  0x1a   :  { %303 = vmatprep.subr.bf16.mxu0 %v3032_v7  ;;  %v3040_v17 = vcombine.high %v79_v8, %v83_v9  ;;  %v87_v21 = vld [vmem:[%s4496_s2 + $0xc0] sm:$0xff]  ;;  %v3039_v24 = vcombine.low %v79_v8, %v83_v9  ;;  %344 = vmatprep.subr.bf16.mxu1 %v3034_v18  ;;  %v3042_v25 = vcombine.high %v80_v19, %v84_v20  ;;  %v88_v27 = vld [vmem:[%s4496_s2 + $0xc8] sm:$0xff]  ;;  %v70_v39 = vld [vmem:[%s4496_s2 + $0x38] sm:$0xff]  ;;  %p3966_p11 = por %p3965_p10, %p3964_p9 }
  0x1b   :  { %v91_v22 = vld [vmem:[%s4496_s2 + $0xe0] sm:$0xff]  ;;  %v92_v28 = vld [vmem:[%s4496_s2 + $0xe8] sm:$0xff]  ;;  %v3041_v31 = vcombine.low %v80_v19, %v84_v20  ;;  %v3030_v44 = vcombine.high %v66_v38, %v70_v39  ;;  %v74_v45 = vld [vmem:[%s4496_s2 + $0x58] sm:$0xff]  ;;  %v3029_v49 = vcombine.low %v66_v38, %v70_v39 }
  0x1c   :  { %v3048_v26 = vcombine.high %v87_v21, %v91_v22  ;;  %v3047_v32 = vcombine.low %v87_v21, %v91_v22  ;;  %v61_v33 = vld [vmem:[%s4494_s0] sm:$0xff]  ;;  %v3050_v34 = vcombine.high %v88_v27, %v92_v28  ;;  %v3049_v41 = vcombine.low %v88_v27, %v92_v28  ;;  %v78_v46 = vld [vmem:[%s4496_s2 + $0x78] sm:$0xff]  ;;  %v81_v47 = vld [vmem:[%s4496_s2 + $0x90] sm:$0xff]  ;;  %p3967_p12 = pnand %p3966_p11, %p3960_p8 }
  0x1d   :  { %304 = vmatpush1.bf16.msra.mxu0 %v3031_v13  ;;  %345 = vmatpush1.bf16.msra.mxu1 %v3033_v23  ;;  %v4199_v40 = vpack.c.bf16 %v61_v33, %v61_v33  ;;  %v85_v48 = vld [vmem:[%s4496_s2 + $0xb0] sm:$0xff]  ;;  %v3038_v51 = vcombine.high %v74_v45, %v78_v46  ;;  %v82_v53 = vld [vmem:[%s4496_s2 + $0x98] sm:$0xff]  ;;  %v3037_v57 = vcombine.low %v74_v45, %v78_v46 }
  0x1e   :  { %305 = vmatprep.subr.bf16.mxu0 %v3040_v17  ;;  %346 = vmatprep.subr.bf16.mxu1 %v3042_v25  ;;  %v3044_v52 = vcombine.high %v81_v47, %v85_v48  ;;  %v86_v54 = vld [vmem:[%s4496_s2 + $0xb8] sm:$0xff]  ;;  %v89_v55 = vld [vmem:[%s4496_s2 + $0xd0] sm:$0xff]  ;;  %v3043_v58 = vcombine.low %v81_v47, %v85_v48 }
  0x1f   :  { %v93_v56 = vld [vmem:[%s4496_s2 + $0xf0] sm:$0xff]  ;;  %v3046_v59 = vcombine.high %v82_v53, %v86_v54  ;;  %v90_v61 = vld [vmem:[%s4496_s2 + $0xd8] sm:$0xff]  ;;  %v3045_v63 = vcombine.low %v82_v53, %v86_v54 }
  0x20   :  { %v3052_v60 = vcombine.high %v89_v55, %v93_v56  ;;  %v94_v62 = vld [vmem:[%s4496_s2 + $0xf8] sm:$0xff]  ;;  %v3051_v1 = vcombine.low %v89_v55, %v93_v56  ;;  %v3493_v2 = vld [vmem:[#allocation2 + $0x4] ss:$16 sps:$4 sm:$0xff]   ;;  %v3491_v4 = vld [vmem:[#allocation2] ss:$16 sps:$4 sm:$0xff]  }
  0x21   :  { %306 = vmatpush1.bf16.msra.mxu0 %v3039_v24  ;;  %347 = vmatpush1.bf16.msra.mxu1 %v3041_v31  ;;  %v3053_v3 = vcombine.low %v90_v61, %v94_v62  ;;  %v3496_v5 = vld [vmem:[#allocation2 + $0xc] ss:$16 sps:$4 sm:$0xff]   ;;  %v3499_v6 = vld [vmem:[#allocation2 + $0x24] ss:$16 sps:$4 sm:$0xff]   ;;  %v3494_v7 = vld [vmem:[#allocation2 + $0x8] ss:$16 sps:$4 sm:$0xff]  }
  0x22   :  { %307 = vmatprep.subr.bf16.mxu0 %v3048_v26  ;;  %348 = vmatprep.subr.bf16.mxu1 %v3050_v34  ;;  %v3497_v8 = vld [vmem:[#allocation2 + $0x20] ss:$16 sps:$4 sm:$0xff]   ;;  %v3502_v9 = vld [vmem:[#allocation2 + $0x2c] ss:$16 sps:$4 sm:$0xff]   ;;  %v3500_v10 = vld [vmem:[#allocation2 + $0x28] ss:$16 sps:$4 sm:$0xff]  }
  0x23   :  { %v3505_v11 = vld [vmem:[#allocation2 + $0x44] ss:$16 sps:$4 sm:$0xff]   ;;  %v3503_v12 = vld [vmem:[#allocation2 + $0x40] ss:$16 sps:$4 sm:$0xff]   ;;  %v3508_v13 = vld [vmem:[#allocation2 + $0x4c] ss:$16 sps:$4 sm:$0xff]  }
  0x24   :  { %v3511_v14 = vld [vmem:[#allocation2 + $0x64] ss:$16 sps:$4 sm:$0xff]   ;;  %v3506_v15 = vld [vmem:[#allocation2 + $0x48] ss:$16 sps:$4 sm:$0xff]   ;;  %v3509_v16 = vld [vmem:[#allocation2 + $0x60] ss:$16 sps:$4 sm:$0xff]  }
  0x25   :  { %308 = vmatpush1.bf16.msra.mxu0 %v3047_v32  ;;  %349 = vmatpush1.bf16.msra.mxu1 %v3049_v41  ;;  %v3514_v17 = vld [vmem:[#allocation2 + $0x6c] ss:$16 sps:$4 sm:$0xff]   ;;  %v3517_v18 = vld [vmem:[#allocation2 + $0x84] ss:$16 sps:$4 sm:$0xff]   ;;  %v3512_v19 = vld [vmem:[#allocation2 + $0x68] ss:$16 sps:$4 sm:$0xff]  }
  0x26   :  { %383 = vmatprep.subr.bf16.mxu0 %v3028_v35  ;;  %424 = vmatprep.subr.bf16.mxu1 %v3030_v44  ;;  %v3515_v20 = vld [vmem:[#allocation2 + $0x80] ss:$16 sps:$4 sm:$0xff]   ;;  %v3520_v21 = vld [vmem:[#allocation2 + $0x8c] ss:$16 sps:$4 sm:$0xff]   ;;  %v3523_v22 = vld [vmem:[#allocation2 + $0xa4] ss:$16 sps:$4 sm:$0xff]  }
  0x27   :  { %v3518_v23 = vld [vmem:[#allocation2 + $0x88] ss:$16 sps:$4 sm:$0xff]   ;;  %v3521_v24 = vld [vmem:[#allocation2 + $0xa0] ss:$16 sps:$4 sm:$0xff]   ;;  %v3526_v25 = vld [vmem:[#allocation2 + $0xac] ss:$16 sps:$4 sm:$0xff]  }
  0x28   :  { %3055 = vmatmul.mubr.msk.bf16.vlgmr.msra.gmra.mrb[0].mxu0 %vm297_vm0, %v4199_v40  ;;  %3056 = vmatmul.mubr.msk.bf16.vlgmr.msra.gmra.mrb[0].mxu1 %vm297_vm0, %v4199_v40  ;;  %v3529_v26 = vld [vmem:[#allocation2 + $0xc4] ss:$16 sps:$4 sm:$0xff]   ;;  %v3524_v27 = vld [vmem:[#allocation2 + $0xa8] ss:$16 sps:$4 sm:$0xff]   ;;  %v3527_v28 = vld [vmem:[#allocation2 + $0xc0] ss:$16 sps:$4 sm:$0xff]  }
  0x29   :  { %384 = vmatpush1.bf16.msra.mxu0 %v3027_v42  ;;  %415 = vmatprep.mubr.bf16.mxu0 %v4034_v0  ;;  %v3532_v29 = vld [vmem:[#allocation2 + $0xcc] ss:$16 sps:$4 sm:$0xff]   ;;  %v3535_v30 = vld [vmem:[#allocation2 + $0xe4] ss:$16 sps:$4 sm:$0xff]   ;;  %v3530_v31 = vld [vmem:[#allocation2 + $0xc8] ss:$16 sps:$4 sm:$0xff]  }
  0x2a   :  { %385 = vmatprep.subr.bf16.mxu0 %v3036_v43  ;;  %425 = vmatpush1.bf16.msra.mxu1 %v3029_v49  ;;  %v3533_v32 = vld [vmem:[#allocation2 + $0xe0] ss:$16 sps:$4 sm:$0xff]   ;;  %v3538_v33 = vld [vmem:[#allocation2 + $0xec] ss:$16 sps:$4 sm:$0xff]   ;;  %v3541_v34 = vld [vmem:[#allocation2 + $0x104] ss:$16 sps:$4 sm:$0xff]  }
  0x2b   :  { %456 = vmatprep.mubr.bf16.mxu1 %v4034_v0  ;;  %426 = vmatprep.subr.bf16.mxu1 %v3038_v51  ;;  %v3054_v0 = vcombine.high %v90_v61, %v94_v62  ;;  %v3536_v35 = vld [vmem:[#allocation2 + $0xe8] ss:$16 sps:$4 sm:$0xff]   ;;  %v3539_v36 = vld [vmem:[#allocation2 + $0x100] ss:$16 sps:$4 sm:$0xff]   ;;  %v3544_v37 = vld [vmem:[#allocation2 + $0x10c] ss:$16 sps:$4 sm:$0xff]  }
  0x2c   :  { %v3547_v38 = vld [vmem:[#allocation2 + $0x124] ss:$16 sps:$4 sm:$0xff]   ;;  %v3542_v39 = vld [vmem:[#allocation2 + $0x108] ss:$16 sps:$4 sm:$0xff]   ;;  %v3550_v41 = vld [vmem:[#allocation2 + $0x12c] ss:$16 sps:$4 sm:$0xff]  }
  0x2d   :  { %386 = vmatpush1.bf16.msra.mxu0 %v3035_v50  ;;  %v3548_v42 = vld [vmem:[#allocation2 + $0x128] ss:$16 sps:$4 sm:$0xff]   ;;  %v3553_v43 = vld [vmem:[#allocation2 + $0x144] ss:$16 sps:$4 sm:$0xff]   ;;  %v3556_v44 = vld [vmem:[#allocation2 + $0x14c] ss:$16 sps:$4 sm:$0xff]  }
  0x2e   :  { %387 = vmatprep.subr.bf16.mxu0 %v3044_v52  ;;  %427 = vmatpush1.bf16.msra.mxu1 %v3037_v57  ;;  %v3551_v45 = vld [vmem:[#allocation2 + $0x140] ss:$16 sps:$4 sm:$0xff]   ;;  %v3554_v46 = vld [vmem:[#allocation2 + $0x148] ss:$16 sps:$4 sm:$0xff]   ;;  %v3559_v47 = vld [vmem:[#allocation2 + $0x164] ss:$16 sps:$4 sm:$0xff]  }
  0x2f   :  { %428 = vmatprep.subr.bf16.mxu1 %v3046_v59  ;;  %v3562_v48 = vld [vmem:[#allocation2 + $0x16c] ss:$16 sps:$4 sm:$0xff]   ;;  %v3557_v49 = vld [vmem:[#allocation2 + $0x160] ss:$16 sps:$4 sm:$0xff]   ;;  %v3560_v50 = vld [vmem:[#allocation2 + $0x168] ss:$16 sps:$4 sm:$0xff]  }
  0x30   :  { %v3565_v51 = vld [vmem:[#allocation2 + $0x184] ss:$16 sps:$4 sm:$0xff]   ;;  %v3568_v52 = vld [vmem:[#allocation2 + $0x18c] ss:$16 sps:$4 sm:$0xff]   ;;  %v3563_v53 = vld [vmem:[#allocation2 + $0x180] ss:$16 sps:$4 sm:$0xff]  }
  0x31   :  { %388 = vmatpush1.bf16.msra.mxu0 %v3043_v58  ;;  %v3566_v54 = vld [vmem:[#allocation2 + $0x188] ss:$16 sps:$4 sm:$0xff]   ;;  %v3571_v55 = vld [vmem:[#allocation2 + $0x1a4] ss:$16 sps:$4 sm:$0xff]   ;;  %v3574_v56 = vld [vmem:[#allocation2 + $0x1ac] ss:$16 sps:$4 sm:$0xff]  }
  0x32   :  { %389 = vmatprep.subr.bf16.mxu0 %v3052_v60  ;;  %429 = vmatpush1.bf16.msra.mxu1 %v3045_v63  ;;  %v3569_v57 = vld [vmem:[#allocation2 + $0x1a0] ss:$16 sps:$4 sm:$0xff]   ;;  %v3572_v58 = vld [vmem:[#allocation2 + $0x1a8] ss:$16 sps:$4 sm:$0xff]   ;;  %v3577_v59 = vld [vmem:[#allocation2 + $0x1c4] ss:$16 sps:$4 sm:$0xff]  }
  0x33   :  { %430 = vmatprep.subr.bf16.mxu1 %v3054_v0  ;;  %v3580_v60 = vld [vmem:[#allocation2 + $0x1cc] ss:$16 sps:$4 sm:$0xff]   ;;  %v3575_v61 = vld [vmem:[#allocation2 + $0x1c0] ss:$16 sps:$4 sm:$0xff]   ;;  %v3578_v62 = vld [vmem:[#allocation2 + $0x1c8] ss:$16 sps:$4 sm:$0xff]  }
  0x34   :  { %v3583_v63 = vld [vmem:[#allocation2 + $0x1e4] ss:$16 sps:$4 sm:$0xff]   ;;  %v3581_v0 = vld [vmem:[#allocation2 + $0x1e0] ss:$16 sps:$4 sm:$0xff]  }
  0x35   :  { %390 = vmatpush1.bf16.msra.mxu0 %v3051_v1  ;;  %v3586_v1 = vld [vmem:[#allocation2 + $0x1ec] ss:$16 sps:$4 sm:$0xff]  }
  0x36   :  { %2087 = vmatprep.subr.bf16.mxu0 %v3493_v2  ;;  %431 = vmatpush1.bf16.msra.mxu1 %v3053_v3  ;;  %v3584_v2 = vld [vmem:[#allocation2 + $0x1e8] ss:$16 sps:$4 sm:$0xff]   ;;  %v3589_v3 = vld [vmem:[#allocation2 + $0x204] ss:$16 sps:$4 sm:$0xff]  }
  0x37   :  { %2251 = vmatprep.subr.bf16.mxu1 %v3496_v5  ;;  %v97_v5 = vlaneseq }
  0x38   :  { %3057 = vmatmul.mubr.msk.bf16.vlgmr.msra.gmra.mrb[4].mxu0 %vm297_vm0, %v4199_v40 }
  0x39   :  { %2088 = vmatpush1.bf16.msra.mxu0 %v3491_v4  ;;  %3058 = vmatmul.mubr.msk.bf16.vlgmr.msra.gmra.mrb[4].mxu1 %vm297_vm0, %v4199_v40  ;;  %v3545_v40 = vld [vmem:[#allocation2 + $0x120] ss:$16 sps:$4 sm:$0xff]   ;;  %v3592_v4 = vld [vmem:[#allocation2 + $0x20c] ss:$16 sps:$4 sm:$0xff]   ;;  %vm2967_vm0 = vcmask 130048  }
  0x3a   :  { %2089 = vmatprep.subr.bf16.mxu0 %v3499_v6  ;;  %2252 = vmatpush1.bf16.msra.mxu1 %v3494_v7  ;;  %v4241_v6 = vshrl.u32 %v97_v5, 7  ;;  %v3616_v5 = vld [vmem:[#allocation2 + $0x28c] ss:$16 sps:$4 sm:$0xff]  }
  0x3b   :  { %2253 = vmatprep.subr.bf16.mxu1 %v3502_v9 }
  0x3c   :  { %v99_v7 = vsub.s32 0, %v4241_v6  ;;  %v103_v9 = vsub.s32 1, %v4241_v6 }
  0x3d   :  { %2090 = vmatpush1.bf16.msra.mxu0 %v3497_v8  ;;  %v4247_v8 = vld [vmem:[%s4497_s3] sm:$0xff] }
  0x3e   :  { %2091 = vmatprep.subr.bf16.mxu0 %v3505_v11  ;;  %2254 = vmatpush1.bf16.msra.mxu1 %v3500_v10  ;;  %v100_v10 = vrot.slane %v4247_v8, %v99_v7  ;;  %v111_v11 = vsub.s32 3, %v4241_v6 }
  0x3f   :  { %2255 = vmatprep.subr.bf16.mxu1 %v3508_v13 }
  0x41   :  { %2092 = vmatpush1.bf16.msra.mxu0 %v3503_v12  ;;  %v104_v12 = vrot.slane %v4247_v8, %v103_v9 }
  0x42   :  { %2093 = vmatprep.subr.bf16.mxu0 %v3511_v14  ;;  %2256 = vmatpush1.bf16.msra.mxu1 %v3506_v15 }
  0x43   :  { %2257 = vmatprep.subr.bf16.mxu1 %v3514_v17 }
  0x45   :  { %2094 = vmatpush1.bf16.msra.mxu0 %v3509_v16  ;;  %v112_v16 = vrot.slane %v4247_v8, %v111_v11 }
  0x46   :  { %2095 = vmatprep.subr.bf16.mxu0 %v3517_v18  ;;  %2258 = vmatpush1.bf16.msra.mxu1 %v3512_v19 }
  0x47   :  { %2259 = vmatprep.subr.bf16.mxu1 %v3520_v21 }
  0x49   :  { %2096 = vmatpush1.bf16.msra.mxu0 %v3515_v20 }
  0x4a   :  { %2097 = vmatprep.subr.bf16.mxu0 %v3523_v22  ;;  %2260 = vmatpush1.bf16.msra.mxu1 %v3518_v23 }
  0x4b   :  { %2261 = vmatprep.subr.bf16.mxu1 %v3526_v25 }
  0x4d   :  { %2098 = vmatpush1.bf16.msra.mxu0 %v3521_v24 }
  0x4e   :  { %2099 = vmatprep.subr.bf16.mxu0 %v3529_v26  ;;  %2262 = vmatpush1.bf16.msra.mxu1 %v3524_v27 }
  0x4f   :  { %2263 = vmatprep.subr.bf16.mxu1 %v3532_v29 }
  0x51   :  { %2100 = vmatpush1.bf16.msra.mxu0 %v3527_v28 }
  0x52   :  { %2101 = vmatprep.subr.bf16.mxu0 %v3535_v30  ;;  %2264 = vmatpush1.bf16.msra.mxu1 %v3530_v31 }
  0x53   :  { %2265 = vmatprep.subr.bf16.mxu1 %v3538_v33 }
  0x55   :  { %2102 = vmatpush1.bf16.msra.mxu0 %v3533_v32 }
  0x56   :  { %2103 = vmatprep.subr.bf16.mxu0 %v3541_v34  ;;  %2266 = vmatpush1.bf16.msra.mxu1 %v3536_v35 }
  0x57   :  { %2267 = vmatprep.subr.bf16.mxu1 %v3544_v37 }
  0x59   :  { %2104 = vmatpush1.bf16.msra.mxu0 %v3539_v36 }
  0x5a   :  { %2105 = vmatprep.subr.bf16.mxu0 %v3547_v38  ;;  %2268 = vmatpush1.bf16.msra.mxu1 %v3542_v39 }
  0x5b   :  { %2269 = vmatprep.subr.bf16.mxu1 %v3550_v41 }
  0x5d   :  { %2106 = vmatpush1.bf16.msra.mxu0 %v3545_v40 }
  0x5e   :  { %2270 = vmatpush1.bf16.msra.mxu1 %v3548_v42  ;;  %2107 = vmatprep.subr.bf16.mxu0 %v3553_v43 }
  0x5f   :  { %2271 = vmatprep.subr.bf16.mxu1 %v3556_v44 }
  0x61   :  { %2108 = vmatpush1.bf16.msra.mxu0 %v3551_v45 }
  0x62   :  { %2272 = vmatpush1.bf16.msra.mxu1 %v3554_v46  ;;  %2109 = vmatprep.subr.bf16.mxu0 %v3559_v47  ;;  %v3587_v46 = vld [vmem:[#allocation2 + $0x200] ss:$16 sps:$4 sm:$0xff]   ;;  %v3590_v47 = vld [vmem:[#allocation2 + $0x208] ss:$16 sps:$4 sm:$0xff]  }
  0x63   :  { %2273 = vmatprep.subr.bf16.mxu1 %v3562_v48 }
  0x65   :  { %2110 = vmatpush1.bf16.msra.mxu0 %v3557_v49 }
  0x66   :  { %2274 = vmatpush1.bf16.msra.mxu1 %v3560_v50  ;;  %2111 = vmatprep.subr.bf16.mxu0 %v3565_v51  ;;  %v3595_v50 = vld [vmem:[#allocation2 + $0x224] ss:$16 sps:$4 sm:$0xff]   ;;  %v3598_v51 = vld [vmem:[#allocation2 + $0x22c] ss:$16 sps:$4 sm:$0xff]  }
  0x67   :  { %2275 = vmatprep.subr.bf16.mxu1 %v3568_v52 }
  0x69   :  { %2112 = vmatpush1.bf16.msra.mxu0 %v3563_v53 }
  0x6a   :  { %2276 = vmatpush1.bf16.msra.mxu1 %v3566_v54  ;;  %2113 = vmatprep.subr.bf16.mxu0 %v3571_v55  ;;  %v3593_v54 = vld [vmem:[#allocation2 + $0x220] ss:$16 sps:$4 sm:$0xff]   ;;  %v3596_v55 = vld [vmem:[#allocation2 + $0x228] ss:$16 sps:$4 sm:$0xff]  }
  0x6b   :  { %2277 = vmatprep.subr.bf16.mxu1 %v3574_v56 }
  0x6d   :  { %2114 = vmatpush1.bf16.msra.mxu0 %v3569_v57  ;;  %v3601_v57 = vld [vmem:[#allocation2 + $0x244] ss:$16 sps:$4 sm:$0xff]  }
  0x6e   :  { %2278 = vmatpush1.bf16.msra.mxu1 %v3572_v58  ;;  %2115 = vmatprep.subr.bf16.mxu0 %v3577_v59  ;;  %v3604_v58 = vld [vmem:[#allocation2 + $0x24c] ss:$16 sps:$4 sm:$0xff]  }
  0x6f   :  { %2279 = vmatprep.subr.bf16.mxu1 %v3580_v60 }
  0x71   :  { %2116 = vmatpush1.bf16.msra.mxu0 %v3575_v61 }
  0x72   :  { %2280 = vmatpush1.bf16.msra.mxu1 %v3578_v62  ;;  %2117 = vmatprep.subr.bf16.mxu0 %v3583_v63  ;;  %v3599_v62 = vld [vmem:[#allocation2 + $0x240] ss:$16 sps:$4 sm:$0xff]   ;;  %v3602_v63 = vld [vmem:[#allocation2 + $0x248] ss:$16 sps:$4 sm:$0xff]  }
  0x73   :  { %2281 = vmatprep.subr.bf16.mxu1 %v3586_v1  ;;  %v3607_v1 = vld [vmem:[#allocation2 + $0x264] ss:$16 sps:$4 sm:$0xff]  }
  0x75   :  { %2118 = vmatpush1.bf16.msra.mxu0 %v3581_v0  ;;  %v3610_v0 = vld [vmem:[#allocation2 + $0x26c] ss:$16 sps:$4 sm:$0xff]  }
  0x76   :  { %2282 = vmatpush1.bf16.msra.mxu1 %v3584_v2  ;;  %2128 = vmatprep.subr.bf16.mxu0 %v3589_v3  ;;  %v3605_v2 = vld [vmem:[#allocation2 + $0x260] ss:$16 sps:$4 sm:$0xff]   ;;  %v3608_v3 = vld [vmem:[#allocation2 + $0x268] ss:$16 sps:$4 sm:$0xff]  }
  0x77   :  { %2292 = vmatprep.subr.bf16.mxu1 %v3592_v4  ;;  %v3613_v4 = vld [vmem:[#allocation2 + $0x284] ss:$16 sps:$4 sm:$0xff]  }
  0xfb   :  { %v335_v13 = vpop.f32.mrb[0].mxu0  ;;  %v4260_v21 = vpop.f32.mrb[0].mxu1 }
  0xfc   :  { %v336_v14 = vadd.f32 %v335_v13, %v100_v10  ;;  %v337_v15 = vpop.f32.mrb[1].mxu0  ;;  %v378_v23 = vpop.f32.mrb[1].mxu1  ;;  %v3611_v10 = vld [vmem:[#allocation2 + $0x280] ss:$16 sps:$4 sm:$0xff]   ;;  %v3619_v13 = vld [vmem:[#allocation2 + $0x2a4] ss:$16 sps:$4 sm:$0xff]  }
  0xfd   :  { %v338_v17 = vadd.f32 %v337_v15, %v104_v12  ;;  %v339_v18 = vpop.f32.mrb[2].mxu0  ;;  %v379_v24 = vadd.f32 %v378_v23, %v112_v16  ;;  %v380_v25 = vpop.f32.mrb[2].mxu1  ;;  %v3614_v12 = vld [vmem:[#allocation2 + $0x288] ss:$16 sps:$4 sm:$0xff]   ;;  %v3617_v15 = vld [vmem:[#allocation2 + $0x2a0] ss:$16 sps:$4 sm:$0xff]  }
  0xfe   :  { %v473_v19 = vmul.f32 1.442695, %v336_v14  ;;  %v340_v20 = vpop.f32.mrb[3].mxu0  ;;  %v381_v26 = vpop.f32.mrb[3].mxu1  ;;  %vm465_vm1 = vcmp.gt.f32.partialorder %v336_v14, 0.0 }
  0xff   :  { %v475_v22 = vmul.f32 1.442695, %v338_v17  ;;  %v479_v27 = vmul.f32 1.442695, %v379_v24  ;;  %vm466_vm2 = vcmp.gt.f32.partialorder %v338_v17, 0.0  ;;  %vm468_vm3 = vcmp.gt.f32.partialorder %v379_v24, 0.0 }
 0x100   :  { %3907 = vpow2.f32 %v473_v19  ;;  %v3620_v16 = vld [vmem:[#allocation2 + $0x2a8] ss:$16 sps:$4 sm:$0xff]   ;;  %v3625_v18 = vld [vmem:[#allocation2 + $0x2c4] ss:$16 sps:$4 sm:$0xff]   ;;  %v3628_v19 = vld [vmem:[#allocation2 + $0x2cc] ss:$16 sps:$4 sm:$0xff]  }
 0x101   :  { %3909 = vpow2.f32 %v475_v22  ;;  %v119_v20 = vsub.s32 5, %v4241_v6  ;;  %v3623_v22 = vld [vmem:[#allocation2 + $0x2c0] ss:$16 sps:$4 sm:$0xff]   ;;  %v3626_v23 = vld [vmem:[#allocation2 + $0x2c8] ss:$16 sps:$4 sm:$0xff]  }
 0x102   :  { %3911 = vpow2.f32 %v479_v27  ;;  %v3631_v25 = vld [vmem:[#allocation2 + $0x2e4] ss:$16 sps:$4 sm:$0xff]   ;;  %v3634_v26 = vld [vmem:[#allocation2 + $0x2ec] ss:$16 sps:$4 sm:$0xff]  }
 0x103   :  { %v120_v27 = vrot.slane %v4247_v8, %v119_v20  ;;  %v3688_v20 = vld [vmem:[#allocation2 + $0x40c] ss:$16 sps:$4 sm:$0xff]  }
 0x10a   :  { %v3908_v28 = vpop.eup %3907 }
 0x10b   :  { %v3910_v29 = vpop.eup %3909  ;;  %v3059_v30 = vadd.f32 -1.0, %v3908_v28  ;;  %v4262_v31 = vpop.f32.mrb[4].mxu0  ;;  %v3629_v28 = vld [vmem:[#allocation2 + $0x2e0] ss:$16 sps:$4 sm:$0xff]  }
 0x10c   :  { %v3060_v32 = vadd.f32 -1.0, %v3910_v29  ;;  %v4264_v33 = vpop.f32.mrb[5].mxu0  ;;  %v3912_v36 = vpop.eup %3911  ;;  %v3632_v29 = vld [vmem:[#allocation2 + $0x2e8] ss:$16 sps:$4 sm:$0xff]  }
 0x10d   :  { %v497_v34 = vmul.f32 1.6732632, %v3059_v30  ;;  %v421_v35 = vpop.f32.mrb[6].mxu0  ;;  %v3062_v39 = vadd.f32 -1.0, %v3912_v36  ;;  %v4266_v56 = vpop.f32.mrb[4].mxu1 }
 0x10e   :  { %v498_v37 = vmul.f32 1.6732632, %v3060_v32  ;;  %v422_v40 = vpop.f32.mrb[7].mxu0  ;;  %v4268_v59 = vpop.f32.mrb[5].mxu1  ;;  %v3637_v32 = vld [vmem:[#allocation2 + $0x304] ss:$16 sps:$4 sm:$0xff]   ;;  %v4280_v35 = vadd.f32 %v4264_v33, %v120_v27 }
 0x10f   :  { %v505_v38 = vsel %vm465_vm1, %v336_v14, %v497_v34  ;;  %v500_v44 = vmul.f32 1.6732632, %v3062_v39  ;;  %v462_v60 = vpop.f32.mrb[6].mxu1  ;;  %v3622_v14 = vld [vmem:[#allocation2 + $0x2ac] ss:$16 sps:$4 sm:$0xff]  }
 0x110   :  { %v513_v41 = vmul.f32 1.050701, %v505_v38  ;;  %v506_v42 = vsel %vm466_vm2, %v338_v17, %v498_v37  ;;  %v463_v61 = vpop.f32.mrb[7].mxu1  ;;  %v107_v17 = vsub.s32 2, %v4241_v6  ;;  %v3640_v34 = vld [vmem:[#allocation2 + $0x30c] ss:$16 sps:$4 sm:$0xff]  }
 0x111   :  { %v514_v43 = vmul.f32 1.050701, %v506_v42  ;;  %v508_v48 = vsel %vm468_vm3, %v379_v24, %v500_v44  ;;  %v3635_v36 = vld [vmem:[#allocation2 + $0x300] ss:$16 sps:$4 sm:$0xff]   ;;  %v3638_v37 = vld [vmem:[#allocation2 + $0x308] ss:$16 sps:$4 sm:$0xff]  }
 0x112   :  { %v521_v49 = vpack.c.bf16 %v513_v41, %v513_v41  ;;  %v516_v52 = vmul.f32 1.050701, %v508_v48  ;;  %v108_v24 = vrot.slane %v4247_v8, %v107_v17  ;;  %v3643_v39 = vld [vmem:[#allocation2 + $0x324] ss:$16 sps:$4 sm:$0xff]   ;;  %v3646_v40 = vld [vmem:[#allocation2 + $0x32c] ss:$16 sps:$4 sm:$0xff]  }
 0x113   :  { %v522_v45 = vpack.c.bf16 %v514_v43, %v514_v43  ;;  %v3641_v41 = vld [vmem:[#allocation2 + $0x320] ss:$16 sps:$4 sm:$0xff]   ;;  %v3644_v42 = vld [vmem:[#allocation2 + $0x328] ss:$16 sps:$4 sm:$0xff]   ;;  %v3649_v33 = vld [vmem:[#allocation2 + $0x344] ss:$16 sps:$4 sm:$0xff]  }
 0x114   :  { %v524_v53 = vpack.c.bf16 %v516_v52, %v516_v52  ;;  %v4277_v30 = vadd.f32 %v4260_v21, %v108_v24  ;;  %v483_v21 = vmul.f32 1.442695, %v4280_v35  ;;  %v3652_v43 = vld [vmem:[#allocation2 + $0x34c] ss:$16 sps:$4 sm:$0xff]   ;;  %v3647_v44 = vld [vmem:[#allocation2 + $0x340] ss:$16 sps:$4 sm:$0xff]  }
 0x115   :  { %2119 = vmatprep.mubr.bf16.mxu0 %v522_v45  ;;  %2283 = vmatprep.mubr.bf16.mxu1 %v522_v45  ;;  %v3650_v45 = vld [vmem:[#allocation2 + $0x348] ss:$16 sps:$4 sm:$0xff]   ;;  %v3653_v48 = vld [vmem:[#allocation2 + $0x360] ss:$16 sps:$4 sm:$0xff]   ;;  %vm470_vm5 = vcmp.gt.f32.partialorder %v4280_v35, 0.0 }
 0x116   :  { %2120 = vmatmul.mubr.bf16.vlgmr.msra.gmra.mrb[8].mxu0 %v521_v49  ;;  %2284 = vmatmul.mubr.bf16.vlgmr.msra.gmra.mrb[8].mxu1 %v521_v49  ;;  %v477_v38 = vmul.f32 1.442695, %v4277_v30  ;;  %v3656_v49 = vld [vmem:[#allocation2 + $0x368] ss:$16 sps:$4 sm:$0xff]   ;;  %vm467_vm4 = vcmp.gt.f32.partialorder %v4277_v30, 0.0 }
 0x117   :  { %2129 = vmatpush1.bf16.msra.mxu0 %v3587_v46  ;;  %2293 = vmatpush1.bf16.msra.mxu1 %v3590_v47  ;;  %v3655_v46 = vld [vmem:[#allocation2 + $0x364] ss:$16 sps:$4 sm:$0xff]   ;;  %v3658_v47 = vld [vmem:[#allocation2 + $0x36c] ss:$16 sps:$4 sm:$0xff]   ;;  %v3686_v24 = vld [vmem:[#allocation2 + $0x408] ss:$16 sps:$4 sm:$0xff]  }
 0x118   :  { %2130 = vmatprep.subr.bf16.mxu0 %v3595_v50  ;;  %2294 = vmatprep.subr.bf16.mxu1 %v3598_v51  ;;  %3913 = vpow2.f32 %v477_v38  ;;  %v3661_v50 = vld [vmem:[#allocation2 + $0x384] ss:$16 sps:$4 sm:$0xff]   ;;  %v3664_v51 = vld [vmem:[#allocation2 + $0x38c] ss:$16 sps:$4 sm:$0xff]  }
 0x119   :  { %2160 = vmatprep.mubr.bf16.mxu0 %v524_v53  ;;  %2324 = vmatprep.mubr.bf16.mxu1 %v524_v53  ;;  %3915 = vpow2.f32 %v483_v21  ;;  %v3694_v27 = vld [vmem:[#allocation2 + $0x42c] ss:$16 sps:$4 sm:$0xff]   ;;  %v3709_v21 = vld [vmem:[#allocation2 + $0x484] ss:$16 sps:$4 sm:$0xff]  }
 0x11a   :  { %v3706_v38 = vld [vmem:[#allocation2 + $0x46c] ss:$16 sps:$4 sm:$0xff]  }
 0x11b   :  { %2131 = vmatpush1.bf16.msra.mxu0 %v3593_v54  ;;  %2295 = vmatpush1.bf16.msra.mxu1 %v3596_v55  ;;  %v3659_v54 = vld [vmem:[#allocation2 + $0x380] ss:$16 sps:$4 sm:$0xff]   ;;  %v3662_v55 = vld [vmem:[#allocation2 + $0x388] ss:$16 sps:$4 sm:$0xff]  }
 0x11c   :  { %2132 = vmatprep.subr.bf16.mxu0 %v3601_v57  ;;  %2296 = vmatprep.subr.bf16.mxu1 %v3604_v58  ;;  %v3667_v57 = vld [vmem:[#allocation2 + $0x3a4] ss:$16 sps:$4 sm:$0xff]   ;;  %v3670_v58 = vld [vmem:[#allocation2 + $0x3ac] ss:$16 sps:$4 sm:$0xff]  }
 0x11f   :  { %2133 = vmatpush1.bf16.msra.mxu0 %v3599_v62  ;;  %2297 = vmatpush1.bf16.msra.mxu1 %v3602_v63  ;;  %v3665_v62 = vld [vmem:[#allocation2 + $0x3a0] ss:$16 sps:$4 sm:$0xff]   ;;  %v3668_v63 = vld [vmem:[#allocation2 + $0x3a8] ss:$16 sps:$4 sm:$0xff]  }
 0x120   :  { %2134 = vmatprep.subr.bf16.mxu0 %v3607_v1  ;;  %2298 = vmatprep.subr.bf16.mxu1 %v3610_v0  ;;  %v3673_v1 = vld [vmem:[#allocation2 + $0x3c4] ss:$16 sps:$4 sm:$0xff]   ;;  %v3676_v0 = vld [vmem:[#allocation2 + $0x3cc] ss:$16 sps:$4 sm:$0xff]  }
 0x122   :  { %v3914_v52 = vpop.eup %3913 }
 0x123   :  { %2135 = vmatpush1.bf16.msra.mxu0 %v3605_v2  ;;  %2299 = vmatpush1.bf16.msra.mxu1 %v3608_v3  ;;  %v3916_v53 = vpop.eup %3915  ;;  %v3061_v60 = vadd.f32 -1.0, %v3914_v52  ;;  %v3722_v52 = vld [vmem:[#allocation2 + $0x4c8] ss:$16 sps:$4 sm:$0xff]  }
 0x124   :  { %2136 = vmatprep.subr.bf16.mxu0 %v3613_v4  ;;  %2300 = vmatprep.subr.bf16.mxu1 %v3616_v5  ;;  %v3064_v61 = vadd.f32 -1.0, %v3916_v53  ;;  %v3671_v4 = vld [vmem:[#allocation2 + $0x3c0] ss:$16 sps:$4 sm:$0xff]   ;;  %v3674_v5 = vld [vmem:[#allocation2 + $0x3c8] ss:$16 sps:$4 sm:$0xff]  }
 0x125   :  { %v499_v2 = vmul.f32 1.6732632, %v3061_v60  ;;  %v3728_v60 = vld [vmem:[#allocation2 + $0x4e8] ss:$16 sps:$4 sm:$0xff]  }
 0x126   :  { %v502_v3 = vmul.f32 1.6732632, %v3064_v61 }
 0x127   :  { %2137 = vmatpush1.bf16.msra.mxu0 %v3611_v10  ;;  %2301 = vmatpush1.bf16.msra.mxu1 %v3614_v12  ;;  %v3679_v10 = vld [vmem:[#allocation2 + $0x3e4] ss:$16 sps:$4 sm:$0xff]   ;;  %v3682_v12 = vld [vmem:[#allocation2 + $0x3ec] ss:$16 sps:$4 sm:$0xff]  }
 0x128   :  { %2138 = vmatprep.subr.bf16.mxu0 %v3619_v13  ;;  %2302 = vmatprep.subr.bf16.mxu1 %v3622_v14  ;;  %v507_v13 = vsel %vm467_vm4, %v4277_v30, %v499_v2  ;;  %v510_v14 = vsel %vm470_vm5, %v4280_v35, %v502_v3  ;;  %v3692_v30 = vld [vmem:[#allocation2 + $0x428] ss:$16 sps:$4 sm:$0xff]   ;;  %v3695_v35 = vld [vmem:[#allocation2 + $0x440] ss:$16 sps:$4 sm:$0xff]  }
 0x129   :  { %v3734_v2 = vld [vmem:[#allocation2 + $0x508] ss:$16 sps:$4 sm:$0xff]  }
 0x12b   :  { %2139 = vmatpush1.bf16.msra.mxu0 %v3617_v15  ;;  %2303 = vmatpush1.bf16.msra.mxu1 %v3620_v16  ;;  %v3677_v15 = vld [vmem:[#allocation2 + $0x3e0] ss:$16 sps:$4 sm:$0xff]   ;;  %v3680_v16 = vld [vmem:[#allocation2 + $0x3e8] ss:$16 sps:$4 sm:$0xff]  }
 0x12c   :  { %2140 = vmatprep.subr.bf16.mxu0 %v3625_v18  ;;  %2304 = vmatprep.subr.bf16.mxu1 %v3628_v19  ;;  %v515_v18 = vmul.f32 1.050701, %v507_v13  ;;  %v3685_v19 = vld [vmem:[#allocation2 + $0x404] ss:$16 sps:$4 sm:$0xff]   ;;  %v3748_v13 = vld [vmem:[#allocation2 + $0x54c] ss:$16 sps:$4 sm:$0xff]  }
 0x12f   :  { %2141 = vmatpush1.bf16.msra.mxu0 %v3623_v22  ;;  %2305 = vmatpush1.bf16.msra.mxu1 %v3626_v23  ;;  %v518_v22 = vmul.f32 1.050701, %v510_v14  ;;  %v3683_v23 = vld [vmem:[#allocation2 + $0x400] ss:$16 sps:$4 sm:$0xff]  }
 0x130   :  { %2142 = vmatprep.subr.bf16.mxu0 %v3631_v25  ;;  %2306 = vmatprep.subr.bf16.mxu1 %v3634_v26  ;;  %v523_v25 = vpack.c.bf16 %v515_v18, %v515_v18  ;;  %v3691_v26 = vld [vmem:[#allocation2 + $0x424] ss:$16 sps:$4 sm:$0xff]   ;;  %v3743_v14 = vld [vmem:[#allocation2 + $0x540] ss:$16 sps:$4 sm:$0xff]   ;;  %v3754_v18 = vld [vmem:[#allocation2 + $0x56c] ss:$16 sps:$4 sm:$0xff]  }
 0x133   :  { %2143 = vmatpush1.bf16.msra.mxu0 %v3629_v28  ;;  %2307 = vmatpush1.bf16.msra.mxu1 %v3632_v29  ;;  %v526_v28 = vpack.c.bf16 %v518_v22, %v518_v22  ;;  %v3689_v29 = vld [vmem:[#allocation2 + $0x420] ss:$16 sps:$4 sm:$0xff]   ;;  %v3757_v22 = vld [vmem:[#allocation2 + $0x584] ss:$16 sps:$4 sm:$0xff]  }
 0x134   :  { %2144 = vmatprep.subr.bf16.mxu0 %v3637_v32  ;;  %2308 = vmatprep.subr.bf16.mxu1 %v3640_v34  ;;  %v3697_v32 = vld [vmem:[#allocation2 + $0x444] ss:$16 sps:$4 sm:$0xff]   ;;  %v3700_v34 = vld [vmem:[#allocation2 + $0x44c] ss:$16 sps:$4 sm:$0xff]  }
 0x137   :  { %2145 = vmatpush1.bf16.msra.mxu0 %v3635_v36  ;;  %2309 = vmatpush1.bf16.msra.mxu1 %v3638_v37  ;;  %v3698_v36 = vld [vmem:[#allocation2 + $0x448] ss:$16 sps:$4 sm:$0xff]   ;;  %v3703_v37 = vld [vmem:[#allocation2 + $0x464] ss:$16 sps:$4 sm:$0xff]  }
 0x138   :  { %2146 = vmatprep.subr.bf16.mxu0 %v3643_v39  ;;  %2310 = vmatprep.subr.bf16.mxu1 %v3646_v40  ;;  %v3701_v39 = vld [vmem:[#allocation2 + $0x460] ss:$16 sps:$4 sm:$0xff]   ;;  %v3704_v40 = vld [vmem:[#allocation2 + $0x468] ss:$16 sps:$4 sm:$0xff]  }
 0x13b   :  { %2147 = vmatpush1.bf16.msra.mxu0 %v3641_v41  ;;  %2311 = vmatpush1.bf16.msra.mxu1 %v3644_v42  ;;  %v3712_v41 = vld [vmem:[#allocation2 + $0x48c] ss:$16 sps:$4 sm:$0xff]   ;;  %v3707_v42 = vld [vmem:[#allocation2 + $0x480] ss:$16 sps:$4 sm:$0xff]  }
 0x13c   :  { %2148 = vmatprep.subr.bf16.mxu0 %v3649_v33  ;;  %2312 = vmatprep.subr.bf16.mxu1 %v3652_v43  ;;  %v3710_v33 = vld [vmem:[#allocation2 + $0x488] ss:$16 sps:$4 sm:$0xff]   ;;  %v3715_v43 = vld [vmem:[#allocation2 + $0x4a4] ss:$16 sps:$4 sm:$0xff]  }
 0x13f   :  { %2149 = vmatpush1.bf16.msra.mxu0 %v3647_v44  ;;  %2313 = vmatpush1.bf16.msra.mxu1 %v3650_v45  ;;  %v3718_v44 = vld [vmem:[#allocation2 + $0x4ac] ss:$16 sps:$4 sm:$0xff]   ;;  %v3713_v45 = vld [vmem:[#allocation2 + $0x4a0] ss:$16 sps:$4 sm:$0xff]  }
 0x140   :  { %2150 = vmatprep.subr.bf16.mxu0 %v3655_v46  ;;  %2314 = vmatprep.subr.bf16.mxu1 %v3658_v47  ;;  %v3716_v46 = vld [vmem:[#allocation2 + $0x4a8] ss:$16 sps:$4 sm:$0xff]   ;;  %v115_v47 = vsub.s32 4, %v4241_v6 }
 0x142   :  { %v116_v53 = vrot.slane %v4247_v8, %v115_v47  ;;  %v3781_v47 = vld [vmem:[#allocation2 + $0x604] ss:$16 sps:$4 sm:$0xff]  }
 0x143   :  { %2151 = vmatpush1.bf16.msra.mxu0 %v3653_v48  ;;  %2315 = vmatpush1.bf16.msra.mxu1 %v3656_v49  ;;  %v3721_v48 = vld [vmem:[#allocation2 + $0x4c4] ss:$16 sps:$4 sm:$0xff]   ;;  %v3724_v49 = vld [vmem:[#allocation2 + $0x4cc] ss:$16 sps:$4 sm:$0xff]  }
 0x144   :  { %2152 = vmatprep.subr.bf16.mxu0 %v3661_v50  ;;  %2316 = vmatprep.subr.bf16.mxu1 %v3664_v51  ;;  %v127_v50 = vsub.s32 7, %v4241_v6  ;;  %v3719_v51 = vld [vmem:[#allocation2 + $0x4c0] ss:$16 sps:$4 sm:$0xff]   ;;  %v4293_v61 = vadd.f32 %v4262_v31, %v116_v53  ;;  %v3787_v53 = vld [vmem:[#allocation2 + $0x624] ss:$16 sps:$4 sm:$0xff]  }
 0x146   :  { %v481_v3 = vmul.f32 1.442695, %v4293_v61  ;;  %vm469_vm6 = vcmp.gt.f32.partialorder %v4293_v61, 0.0 }
 0x147   :  { %2153 = vmatpush1.bf16.msra.mxu0 %v3659_v54  ;;  %2317 = vmatpush1.bf16.msra.mxu1 %v3662_v55  ;;  %v3727_v54 = vld [vmem:[#allocation2 + $0x4e4] ss:$16 sps:$4 sm:$0xff]   ;;  %v3730_v55 = vld [vmem:[#allocation2 + $0x4ec] ss:$16 sps:$4 sm:$0xff]  }
 0x148   :  { %2154 = vmatprep.subr.bf16.mxu0 %v3667_v57  ;;  %2318 = vmatprep.subr.bf16.mxu1 %v3670_v58  ;;  %v128_v57 = vrot.slane %v4247_v8, %v127_v50  ;;  %v3725_v58 = vld [vmem:[#allocation2 + $0x4e0] ss:$16 sps:$4 sm:$0xff]   ;;  %3917 = vpow2.f32 %v481_v3  ;;  %v3800_v3 = vld [vmem:[#allocation2 + $0x668] ss:$16 sps:$4 sm:$0xff]  }
 0x149   :  { %v3779_v50 = vld [vmem:[#allocation2 + $0x600] ss:$16 sps:$4 sm:$0xff]  }
 0x14b   :  { %2155 = vmatpush1.bf16.msra.mxu0 %v3665_v62  ;;  %2319 = vmatpush1.bf16.msra.mxu1 %v3668_v63  ;;  %v3733_v62 = vld [vmem:[#allocation2 + $0x504] ss:$16 sps:$4 sm:$0xff]   ;;  %v3736_v63 = vld [vmem:[#allocation2 + $0x50c] ss:$16 sps:$4 sm:$0xff]  }
 0x14c   :  { %2156 = vmatprep.subr.bf16.mxu0 %v3673_v1  ;;  %2320 = vmatprep.subr.bf16.mxu1 %v3676_v0  ;;  %v4296_v1 = vadd.f32 %v4268_v59, %v128_v57  ;;  %v3731_v0 = vld [vmem:[#allocation2 + $0x500] ss:$16 sps:$4 sm:$0xff]   ;;  %v3745_v59 = vld [vmem:[#allocation2 + $0x544] ss:$16 sps:$4 sm:$0xff]  }
 0x14d   :  { %v3785_v57 = vld [vmem:[#allocation2 + $0x620] ss:$16 sps:$4 sm:$0xff]  }
 0x14e   :  { %v487_v31 = vmul.f32 1.442695, %v4296_v1  ;;  %vm472_vm7 = vcmp.gt.f32.partialorder %v4296_v1, 0.0 }
 0x14f   :  { %2157 = vmatpush1.bf16.msra.mxu0 %v3671_v4  ;;  %2321 = vmatpush1.bf16.msra.mxu1 %v3674_v5  ;;  %v3739_v4 = vld [vmem:[#allocation2 + $0x524] ss:$16 sps:$4 sm:$0xff]   ;;  %v3742_v5 = vld [vmem:[#allocation2 + $0x52c] ss:$16 sps:$4 sm:$0xff]  }
 0x150   :  { %2158 = vmatprep.subr.bf16.mxu0 %v3679_v10  ;;  %2322 = vmatprep.subr.bf16.mxu1 %v3682_v12  ;;  %v3737_v10 = vld [vmem:[#allocation2 + $0x520] ss:$16 sps:$4 sm:$0xff]   ;;  %v3740_v12 = vld [vmem:[#allocation2 + $0x528] ss:$16 sps:$4 sm:$0xff]   ;;  %3919 = vpow2.f32 %v487_v31 }
 0x151   :  { %v3803_v31 = vld [vmem:[#allocation2 + $0x680] ss:$16 sps:$4 sm:$0xff]  }
 0x153   :  { %2159 = vmatpush1.bf16.msra.mxu0 %v3677_v15  ;;  %2323 = vmatpush1.bf16.msra.mxu1 %v3680_v16  ;;  %v3746_v15 = vld [vmem:[#allocation2 + $0x548] ss:$16 sps:$4 sm:$0xff]   ;;  %v3751_v16 = vld [vmem:[#allocation2 + $0x564] ss:$16 sps:$4 sm:$0xff]  }
 0x154   :  { %2169 = vmatprep.subr.bf16.mxu0 %v3685_v19  ;;  %2333 = vmatprep.subr.bf16.mxu1 %v3688_v20  ;;  %v3749_v19 = vld [vmem:[#allocation2 + $0x560] ss:$16 sps:$4 sm:$0xff]   ;;  %v3752_v20 = vld [vmem:[#allocation2 + $0x568] ss:$16 sps:$4 sm:$0xff]  }
 0x156   :  { %2161 = vmatmul.mubr.bf16.vlgmr.msra.gmra.mrb[8].mxu0 %v523_v25  ;;  %2325 = vmatmul.mubr.bf16.vlgmr.msra.gmra.mrb[8].mxu1 %v523_v25 }
 0x157   :  { %2170 = vmatpush1.bf16.msra.mxu0 %v3683_v23  ;;  %2334 = vmatpush1.bf16.msra.mxu1 %v3686_v24  ;;  %v3760_v23 = vld [vmem:[#allocation2 + $0x58c] ss:$16 sps:$4 sm:$0xff]   ;;  %v3918_v24 = vpop.eup %3917 }
 0x158   :  { %2171 = vmatprep.subr.bf16.mxu0 %v3691_v26  ;;  %2335 = vmatprep.subr.bf16.mxu1 %v3694_v27  ;;  %v3755_v26 = vld [vmem:[#allocation2 + $0x580] ss:$16 sps:$4 sm:$0xff]   ;;  %v3758_v27 = vld [vmem:[#allocation2 + $0x588] ss:$16 sps:$4 sm:$0xff]  }
 0x159   :  { %2201 = vmatprep.mubr.bf16.mxu0 %v526_v28  ;;  %2365 = vmatprep.mubr.bf16.mxu1 %v526_v28  ;;  %v3763_v28 = vld [vmem:[#allocation2 + $0x5a4] ss:$16 sps:$4 sm:$0xff]  }
 0x15a   :  { %v3920_v25 = vpop.eup %3919 }
 0x15b   :  { %2172 = vmatpush1.bf16.msra.mxu0 %v3689_v29  ;;  %2336 = vmatpush1.bf16.msra.mxu1 %v3692_v30  ;;  %v3766_v29 = vld [vmem:[#allocation2 + $0x5ac] ss:$16 sps:$4 sm:$0xff]   ;;  %v3063_v30 = vadd.f32 -1.0, %v3918_v24 }
 0x15c   :  { %2173 = vmatprep.subr.bf16.mxu0 %v3697_v32  ;;  %2337 = vmatprep.subr.bf16.mxu1 %v3700_v34  ;;  %v3066_v32 = vadd.f32 -1.0, %v3920_v25  ;;  %v3761_v34 = vld [vmem:[#allocation2 + $0x5a0] ss:$16 sps:$4 sm:$0xff]   ;;  %v3826_v24 = vld [vmem:[#allocation2 + $0x6ec] ss:$16 sps:$4 sm:$0xff]  }
 0x15d   :  { %v3821_v25 = vld [vmem:[#allocation2 + $0x6e0] ss:$16 sps:$4 sm:$0xff]  }
 0x15f   :  { %2174 = vmatpush1.bf16.msra.mxu0 %v3695_v35  ;;  %2338 = vmatpush1.bf16.msra.mxu1 %v3698_v36  ;;  %v3764_v35 = vld [vmem:[#allocation2 + $0x5a8] ss:$16 sps:$4 sm:$0xff]   ;;  %v3769_v36 = vld [vmem:[#allocation2 + $0x5c4] ss:$16 sps:$4 sm:$0xff]  }
 0x160   :  { %2175 = vmatprep.subr.bf16.mxu0 %v3703_v37  ;;  %2339 = vmatprep.subr.bf16.mxu1 %v3706_v38  ;;  %v3772_v37 = vld [vmem:[#allocation2 + $0x5cc] ss:$16 sps:$4 sm:$0xff]   ;;  %v501_v38 = vmul.f32 1.6732632, %v3063_v30  ;;  %v3827_v30 = vld [vmem:[#allocation2 + $0x700] ss:$16 sps:$4 sm:$0xff]  }
 0x163   :  { %2176 = vmatpush1.bf16.msra.mxu0 %v3701_v39  ;;  %2340 = vmatpush1.bf16.msra.mxu1 %v3704_v40  ;;  %v504_v39 = vmul.f32 1.6732632, %v3066_v32  ;;  %v3767_v40 = vld [vmem:[#allocation2 + $0x5c0] ss:$16 sps:$4 sm:$0xff]   ;;  %v3830_v32 = vld [vmem:[#allocation2 + $0x708] ss:$16 sps:$4 sm:$0xff]  }
 0x164   :  { %2177 = vmatprep.subr.bf16.mxu0 %v3709_v21  ;;  %2341 = vmatprep.subr.bf16.mxu1 %v3712_v41  ;;  %v3770_v21 = vld [vmem:[#allocation2 + $0x5c8] ss:$16 sps:$4 sm:$0xff]   ;;  %v3775_v41 = vld [vmem:[#allocation2 + $0x5e4] ss:$16 sps:$4 sm:$0xff]  }
 0x167   :  { %2178 = vmatpush1.bf16.msra.mxu0 %v3707_v42  ;;  %2342 = vmatpush1.bf16.msra.mxu1 %v3710_v33  ;;  %v3778_v42 = vld [vmem:[#allocation2 + $0x5ec] ss:$16 sps:$4 sm:$0xff]   ;;  %v509_v33 = vsel %vm469_vm6, %v4293_v61, %v501_v38 }
 0x168   :  { %2179 = vmatprep.subr.bf16.mxu0 %v3715_v43  ;;  %2343 = vmatprep.subr.bf16.mxu1 %v3718_v44  ;;  %v512_v43 = vsel %vm472_vm7, %v4296_v1, %v504_v39  ;;  %v3773_v44 = vld [vmem:[#allocation2 + $0x5e0] ss:$16 sps:$4 sm:$0xff]   ;;  %v3796_v61 = vld [vmem:[#allocation2 + $0x64c] ss:$16 sps:$4 sm:$0xff]   ;;  %v3799_v1 = vld [vmem:[#allocation2 + $0x664] ss:$16 sps:$4 sm:$0xff]  }
 0x169   :  { %v3844_v38 = vld [vmem:[#allocation2 + $0x74c] ss:$16 sps:$4 sm:$0xff]   ;;  %v3839_v39 = vld [vmem:[#allocation2 + $0x740] ss:$16 sps:$4 sm:$0xff]  }
 0x16b   :  { %2180 = vmatpush1.bf16.msra.mxu0 %v3713_v45  ;;  %2344 = vmatpush1.bf16.msra.mxu1 %v3716_v46  ;;  %v3776_v45 = vld [vmem:[#allocation2 + $0x5e8] ss:$16 sps:$4 sm:$0xff]   ;;  %v517_v46 = vmul.f32 1.050701, %v509_v33 }
 0x16c   :  { %2181 = vmatprep.subr.bf16.mxu0 %v3721_v48  ;;  %2345 = vmatprep.subr.bf16.mxu1 %v3724_v49  ;;  %v3784_v48 = vld [vmem:[#allocation2 + $0x60c] ss:$16 sps:$4 sm:$0xff]   ;;  %v520_v49 = vmul.f32 1.050701, %v512_v43  ;;  %v3848_v33 = vld [vmem:[#allocation2 + $0x768] ss:$16 sps:$4 sm:$0xff]  }
 0x16d   :  { %v3853_v43 = vld [vmem:[#allocation2 + $0x784] ss:$16 sps:$4 sm:$0xff]  }
 0x16f   :  { %2182 = vmatpush1.bf16.msra.mxu0 %v3719_v51  ;;  %2346 = vmatpush1.bf16.msra.mxu1 %v3722_v52  ;;  %v3782_v51 = vld [vmem:[#allocation2 + $0x608] ss:$16 sps:$4 sm:$0xff]   ;;  %v525_v52 = vpack.c.bf16 %v517_v46, %v517_v46  ;;  %v3851_v46 = vld [vmem:[#allocation2 + $0x780] ss:$16 sps:$4 sm:$0xff]  }
 0x170   :  { %2183 = vmatprep.subr.bf16.mxu0 %v3727_v54  ;;  %2347 = vmatprep.subr.bf16.mxu1 %v3730_v55  ;;  %v3790_v54 = vld [vmem:[#allocation2 + $0x62c] ss:$16 sps:$4 sm:$0xff]   ;;  %v528_v55 = vpack.c.bf16 %v520_v49, %v520_v49 }
 0x171   :  { %v3862_v49 = vld [vmem:[#allocation2 + $0x7ac] ss:$16 sps:$4 sm:$0xff]  }
 0x173   :  { %2184 = vmatpush1.bf16.msra.mxu0 %v3725_v58  ;;  %2348 = vmatpush1.bf16.msra.mxu1 %v3728_v60  ;;  %v3788_v58 = vld [vmem:[#allocation2 + $0x628] ss:$16 sps:$4 sm:$0xff]   ;;  %v3793_v60 = vld [vmem:[#allocation2 + $0x644] ss:$16 sps:$4 sm:$0xff]  }
 0x174   :  { %2185 = vmatprep.subr.bf16.mxu0 %v3733_v62  ;;  %2349 = vmatprep.subr.bf16.mxu1 %v3736_v63  ;;  %v3791_v62 = vld [vmem:[#allocation2 + $0x640] ss:$16 sps:$4 sm:$0xff]   ;;  %v3794_v63 = vld [vmem:[#allocation2 + $0x648] ss:$16 sps:$4 sm:$0xff]  }
 0x177   :  { %2186 = vmatpush1.bf16.msra.mxu0 %v3731_v0  ;;  %2350 = vmatpush1.bf16.msra.mxu1 %v3734_v2  ;;  %v3802_v0 = vld [vmem:[#allocation2 + $0x66c] ss:$16 sps:$4 sm:$0xff]   ;;  %v3797_v2 = vld [vmem:[#allocation2 + $0x660] ss:$16 sps:$4 sm:$0xff]  }
 0x178   :  { %2187 = vmatprep.subr.bf16.mxu0 %v3739_v4  ;;  %2351 = vmatprep.subr.bf16.mxu1 %v3742_v5  ;;  %v3805_v4 = vld [vmem:[#allocation2 + $0x684] ss:$16 sps:$4 sm:$0xff]   ;;  %v3808_v5 = vld [vmem:[#allocation2 + $0x68c] ss:$16 sps:$4 sm:$0xff]  }
 0x17b   :  { %2188 = vmatpush1.bf16.msra.mxu0 %v3737_v10  ;;  %2352 = vmatpush1.bf16.msra.mxu1 %v3740_v12  ;;  %v3806_v10 = vld [vmem:[#allocation2 + $0x688] ss:$16 sps:$4 sm:$0xff]   ;;  %v3811_v12 = vld [vmem:[#allocation2 + $0x6a4] ss:$16 sps:$4 sm:$0xff]  }
 0x17c   :  { %2189 = vmatprep.subr.bf16.mxu0 %v3745_v59  ;;  %2353 = vmatprep.subr.bf16.mxu1 %v3748_v13  ;;  %v3814_v59 = vld [vmem:[#allocation2 + $0x6ac] ss:$16 sps:$4 sm:$0xff]   ;;  %v3809_v13 = vld [vmem:[#allocation2 + $0x6a0] ss:$16 sps:$4 sm:$0xff]  }
 0x17f   :  { %2190 = vmatpush1.bf16.msra.mxu0 %v3743_v14  ;;  %2354 = vmatpush1.bf16.msra.mxu1 %v3746_v15  ;;  %v3812_v14 = vld [vmem:[#allocation2 + $0x6a8] ss:$16 sps:$4 sm:$0xff]   ;;  %v123_v15 = vsub.s32 6, %v4241_v6 }
 0x180   :  { %2191 = vmatprep.subr.bf16.mxu0 %v3751_v16  ;;  %2355 = vmatprep.subr.bf16.mxu1 %v3754_v18  ;;  %v3817_v16 = vld [vmem:[#allocation2 + $0x6c4] ss:$16 sps:$4 sm:$0xff]   ;;  %v3820_v18 = vld [vmem:[#allocation2 + $0x6cc] ss:$16 sps:$4 sm:$0xff]  }
 0x183   :  { %2192 = vmatpush1.bf16.msra.mxu0 %v3749_v19  ;;  %2356 = vmatpush1.bf16.msra.mxu1 %v3752_v20  ;;  %v3815_v19 = vld [vmem:[#allocation2 + $0x6c0] ss:$16 sps:$4 sm:$0xff]   ;;  %v3818_v20 = vld [vmem:[#allocation2 + $0x6c8] ss:$16 sps:$4 sm:$0xff]  }
 0x184   :  { %2193 = vmatprep.subr.bf16.mxu0 %v3757_v22  ;;  %2357 = vmatprep.subr.bf16.mxu1 %v3760_v23  ;;  %v124_v22 = vrot.slane %v4247_v8, %v123_v15  ;;  %v3823_v23 = vld [vmem:[#allocation2 + $0x6e4] ss:$16 sps:$4 sm:$0xff]  }
 0x185   :  { %v3884_v15 = vld [vmem:[%s4500_s6 + $0xd0] sm:$0xff]  }
 0x187   :  { %2194 = vmatpush1.bf16.msra.mxu0 %v3755_v26  ;;  %2358 = vmatpush1.bf16.msra.mxu1 %v3758_v27  ;;  %v3824_v26 = vld [vmem:[#allocation2 + $0x6e8] ss:$16 sps:$4 sm:$0xff]   ;;  %v4307_v27 = vadd.f32 %v4266_v56, %v124_v22  ;;  %v3841_v56 = vld [vmem:[#allocation2 + $0x744] ss:$16 sps:$4 sm:$0xff]  }
 0x188   :  { %2195 = vmatprep.subr.bf16.mxu0 %v3763_v28  ;;  %2359 = vmatprep.subr.bf16.mxu1 %v3766_v29  ;;  %v3829_v28 = vld [vmem:[#allocation2 + $0x704] ss:$16 sps:$4 sm:$0xff]   ;;  %v3832_v29 = vld [vmem:[#allocation2 + $0x70c] ss:$16 sps:$4 sm:$0xff]  }
 0x189   :  { %v485_v8 = vmul.f32 1.442695, %v4307_v27  ;;  %vm471_vm8 = vcmp.gt.f32.partialorder %v4307_v27, 0.0  ;;  %v3889_v22 = vld [vmem:[%s4500_s6 + $0x18] sm:$0xff]  }
 0x18b   :  { %2196 = vmatpush1.bf16.msra.mxu0 %v3761_v34  ;;  %2360 = vmatpush1.bf16.msra.mxu1 %v3764_v35  ;;  %v3835_v34 = vld [vmem:[#allocation2 + $0x724] ss:$16 sps:$4 sm:$0xff]   ;;  %v3838_v35 = vld [vmem:[#allocation2 + $0x72c] ss:$16 sps:$4 sm:$0xff]   ;;  %3921 = vpow2.f32 %v485_v8 }
 0x18c   :  { %2197 = vmatprep.subr.bf16.mxu0 %v3769_v36  ;;  %2361 = vmatprep.subr.bf16.mxu1 %v3772_v37  ;;  %v3833_v36 = vld [vmem:[#allocation2 + $0x720] ss:$16 sps:$4 sm:$0xff]   ;;  %v3836_v37 = vld [vmem:[#allocation2 + $0x728] ss:$16 sps:$4 sm:$0xff]  }
 0x18d   :  { %v3899_v8 = vld [vmem:[%s4500_s6 + $0x70] sm:$0xff]  }
 0x18f   :  { %2198 = vmatpush1.bf16.msra.mxu0 %v3767_v40  ;;  %2362 = vmatpush1.bf16.msra.mxu1 %v3770_v21  ;;  %v3842_v40 = vld [vmem:[#allocation2 + $0x748] ss:$16 sps:$4 sm:$0xff]   ;;  %v3847_v21 = vld [vmem:[#allocation2 + $0x764] ss:$16 sps:$4 sm:$0xff]  }
 0x190   :  { %2199 = vmatprep.subr.bf16.mxu0 %v3775_v41  ;;  %2363 = vmatprep.subr.bf16.mxu1 %v3778_v42  ;;  %v3850_v41 = vld [vmem:[#allocation2 + $0x76c] ss:$16 sps:$4 sm:$0xff]   ;;  %v3845_v42 = vld [vmem:[#allocation2 + $0x760] ss:$16 sps:$4 sm:$0xff]  }
 0x193   :  { %2200 = vmatpush1.bf16.msra.mxu0 %v3773_v44  ;;  %2364 = vmatpush1.bf16.msra.mxu1 %v3776_v45  ;;  %v3856_v44 = vld [vmem:[#allocation2 + $0x78c] ss:$16 sps:$4 sm:$0xff]  }
 0x194   :  { %2210 = vmatprep.subr.bf16.mxu0 %v3781_v47  ;;  %2374 = vmatprep.subr.bf16.mxu1 %v3784_v48  ;;  %v3854_v47 = vld [vmem:[#allocation2 + $0x788] ss:$16 sps:$4 sm:$0xff]   ;;  %v3859_v48 = vld [vmem:[#allocation2 + $0x7a4] ss:$16 sps:$4 sm:$0xff]  }
 0x195   :  { %v3922_v45 = vpop.eup %3921 }
 0x196   :  { %2202 = vmatmul.mubr.bf16.vlgmr.msra.gmra.mrb[8].mxu0 %v525_v52  ;;  %2366 = vmatmul.mubr.bf16.vlgmr.msra.gmra.mrb[8].mxu1 %v525_v52  ;;  %v3860_v52 = vld [vmem:[#allocation2 + $0x7a8] ss:$16 sps:$4 sm:$0xff]  }
 0x197   :  { %2211 = vmatpush1.bf16.msra.mxu0 %v3779_v50  ;;  %2375 = vmatpush1.bf16.msra.mxu1 %v3782_v51  ;;  %v3065_v50 = vadd.f32 -1.0, %v3922_v45  ;;  %v3857_v51 = vld [vmem:[#allocation2 + $0x7a0] ss:$16 sps:$4 sm:$0xff]  }
 0x198   :  { %2212 = vmatprep.subr.bf16.mxu0 %v3787_v53  ;;  %2376 = vmatprep.subr.bf16.mxu1 %v3790_v54  ;;  %v3865_v53 = vld [vmem:[#allocation2 + $0x7c4] ss:$16 sps:$4 sm:$0xff]   ;;  %v3868_v54 = vld [vmem:[#allocation2 + $0x7cc] ss:$16 sps:$4 sm:$0xff]  }
 0x199   :  { %2242 = vmatprep.mubr.bf16.mxu0 %v528_v55  ;;  %2406 = vmatprep.mubr.bf16.mxu1 %v528_v55  ;;  %v503_v55 = vmul.f32 1.6732632, %v3065_v50 }
 0x19b   :  { %2213 = vmatpush1.bf16.msra.mxu0 %v3785_v57  ;;  %2377 = vmatpush1.bf16.msra.mxu1 %v3788_v58  ;;  %v3863_v57 = vld [vmem:[#allocation2 + $0x7c0] ss:$16 sps:$4 sm:$0xff]   ;;  %v3866_v58 = vld [vmem:[#allocation2 + $0x7c8] ss:$16 sps:$4 sm:$0xff]  }
 0x19c   :  { %2214 = vmatprep.subr.bf16.mxu0 %v3793_v60  ;;  %2378 = vmatprep.subr.bf16.mxu1 %v3796_v61  ;;  %v3871_v60 = vld [vmem:[#allocation2 + $0x7e4] ss:$16 sps:$4 sm:$0xff]   ;;  %v3874_v61 = vld [vmem:[#allocation2 + $0x7ec] ss:$16 sps:$4 sm:$0xff]  }
 0x19f   :  { %2215 = vmatpush1.bf16.msra.mxu0 %v3791_v62  ;;  %2379 = vmatpush1.bf16.msra.mxu1 %v3794_v63  ;;  %v511_v62 = vsel %vm471_vm8, %v4307_v27, %v503_v55  ;;  %v3869_v63 = vld [vmem:[#allocation2 + $0x7e0] ss:$16 sps:$4 sm:$0xff]  }
 0x1a0   :  { %2216 = vmatprep.subr.bf16.mxu0 %v3799_v1  ;;  %2380 = vmatprep.subr.bf16.mxu1 %v3802_v0  ;;  %v3872_v1 = vld [vmem:[#allocation2 + $0x7e8] ss:$16 sps:$4 sm:$0xff]   ;;  %v519_v0 = vmul.f32 1.050701, %v511_v62  ;;  %v3894_v27 = vld [vmem:[%s4500_s6 + $0xa0] sm:$0xff]  }
 0x1a3   :  { %2217 = vmatpush1.bf16.msra.mxu0 %v3797_v2  ;;  %2381 = vmatpush1.bf16.msra.mxu1 %v3800_v3  ;;  %v3875_v2 = vld [vmem:[%s4500_s6 + $0x40] sm:$0xff]  }
 0x1a4   :  { %2218 = vmatprep.subr.bf16.mxu0 %v3805_v4  ;;  %2382 = vmatprep.subr.bf16.mxu1 %v3808_v5  ;;  %v3876_v3 = vld [vmem:[%s4500_s6 + $0xc0] sm:$0xff]  }
 0x1a5   :  { %v3877_v4 = vld [vmem:[%s4500_s6] sm:$0xff]  }
 0x1a6   :  { %v3878_v5 = vld [vmem:[%s4500_s6 + $0x80] sm:$0xff]  }
 0x1a7   :  { %2219 = vmatpush1.bf16.msra.mxu0 %v3803_v31  ;;  %2383 = vmatpush1.bf16.msra.mxu1 %v3806_v10  ;;  %v527_v31 = vpack.c.bf16 %v519_v0, %v519_v0  ;;  %v3879_v10 = vld [vmem:[%s4500_s6 + $0x48] sm:$0xff]  }
 0x1a8   :  { %2220 = vmatprep.subr.bf16.mxu0 %v3811_v12  ;;  %2384 = vmatprep.subr.bf16.mxu1 %v3814_v59  ;;  %v3880_v12 = vld [vmem:[%s4500_s6 + $0xc8] sm:$0xff]  }
 0x1a9   :  { %v3881_v59 = vld [vmem:[%s4500_s6 + $0x8] sm:$0xff]  }
 0x1ab   :  { %2221 = vmatpush1.bf16.msra.mxu0 %v3809_v13  ;;  %2385 = vmatpush1.bf16.msra.mxu1 %v3812_v14  ;;  %v3882_v13 = vld [vmem:[%s4500_s6 + $0x88] sm:$0xff]   ;;  %v3883_v14 = vld [vmem:[%s4500_s6 + $0x50] sm:$0xff]  }
 0x1ac   :  { %2222 = vmatprep.subr.bf16.mxu0 %v3817_v16  ;;  %2386 = vmatprep.subr.bf16.mxu1 %v3820_v18  ;;  %v3885_v16 = vld [vmem:[%s4500_s6 + $0x10] sm:$0xff]  }
 0x1ad   :  { %v3886_v18 = vld [vmem:[%s4500_s6 + $0x90] sm:$0xff]  }
 0x1af   :  { %2223 = vmatpush1.bf16.msra.mxu0 %v3815_v19  ;;  %2387 = vmatpush1.bf16.msra.mxu1 %v3818_v20  ;;  %v3887_v19 = vld [vmem:[%s4500_s6 + $0x58] sm:$0xff]  }
 0x1b0   :  { %2224 = vmatprep.subr.bf16.mxu0 %v3823_v23  ;;  %2388 = vmatprep.subr.bf16.mxu1 %v3826_v24  ;;  %v3888_v20 = vld [vmem:[%s4500_s6 + $0xd8] sm:$0xff]   ;;  %v3891_v24 = vld [vmem:[%s4500_s6 + $0x60] sm:$0xff]  }
 0x1b1   :  { %v3890_v23 = vld [vmem:[%s4500_s6 + $0x98] sm:$0xff]  }
 0x1b3   :  { %2225 = vmatpush1.bf16.msra.mxu0 %v3821_v25  ;;  %2389 = vmatpush1.bf16.msra.mxu1 %v3824_v26  ;;  %v3892_v25 = vld [vmem:[%s4500_s6 + $0xe0] sm:$0xff]  }
 0x1b4   :  { %2226 = vmatprep.subr.bf16.mxu0 %v3829_v28  ;;  %2390 = vmatprep.subr.bf16.mxu1 %v3832_v29  ;;  %v3893_v26 = vld [vmem:[%s4500_s6 + $0x20] sm:$0xff]   ;;  %v3895_v28 = vld [vmem:[%s4500_s6 + $0x68] sm:$0xff]  }
 0x1b5   :  { %v3896_v29 = vld [vmem:[%s4500_s6 + $0xe8] sm:$0xff]  }
 0x1b7   :  { %2227 = vmatpush1.bf16.msra.mxu0 %v3827_v30  ;;  %2391 = vmatpush1.bf16.msra.mxu1 %v3830_v32  ;;  %v3897_v30 = vld [vmem:[%s4500_s6 + $0x28] sm:$0xff]  }
 0x1b8   :  { %2228 = vmatprep.subr.bf16.mxu0 %v3835_v34  ;;  %2392 = vmatprep.subr.bf16.mxu1 %v3838_v35  ;;  %v3898_v32 = vld [vmem:[%s4500_s6 + $0xa8] sm:$0xff]   ;;  %v3900_v34 = vld [vmem:[%s4500_s6 + $0xf0] sm:$0xff]  }
 0x1b9   :  { %v3901_v35 = vld [vmem:[%s4500_s6 + $0x30] sm:$0xff]  }
 0x1bb   :  { %2229 = vmatpush1.bf16.msra.mxu0 %v3833_v36  ;;  %2393 = vmatpush1.bf16.msra.mxu1 %v3836_v37  ;;  %v3902_v36 = vld [vmem:[%s4500_s6 + $0xb0] sm:$0xff]   ;;  %v3903_v37 = vld [vmem:[%s4500_s6 + $0x78] sm:$0xff]  }
 0x1bc   :  { %2230 = vmatprep.subr.bf16.mxu0 %v3841_v56  ;;  %2394 = vmatprep.subr.bf16.mxu1 %v3844_v38  ;;  %v3904_v56 = vld [vmem:[%s4500_s6 + $0xf8] sm:$0xff]  }
 0x1bd   :  { %v3905_v38 = vld [vmem:[%s4500_s6 + $0x38] sm:$0xff]  }
 0x1bf   :  { %2231 = vmatpush1.bf16.msra.mxu0 %v3839_v39  ;;  %2395 = vmatpush1.bf16.msra.mxu1 %v3842_v40  ;;  %v3906_v39 = vld [vmem:[%s4500_s6 + $0xb8] sm:$0xff]   ;;  %v785_v40 = vld [vmem:[%s4499_s5] sm:$0xf] }
 0x1c0   :  { %2232 = vmatprep.subr.bf16.mxu0 %v3847_v21  ;;  %2396 = vmatprep.subr.bf16.mxu1 %v3850_v41  ;;  %v790_v21 = vrot.slane %v785_v40, %v99_v7  ;;  %v798_v41 = vrot.slane %v785_v40, %v107_v17 }
 0x1c3   :  { %2233 = vmatpush1.bf16.msra.mxu0 %v3845_v42  ;;  %2397 = vmatpush1.bf16.msra.mxu1 %v3848_v33  ;;  %v794_v42 = vrot.slane %v785_v40, %v103_v9  ;;  %v802_v33 = vrot.slane %v785_v40, %v111_v11 }
 0x1c4   :  { %2234 = vmatprep.subr.bf16.mxu0 %v3853_v43  ;;  %2398 = vmatprep.subr.bf16.mxu1 %v3856_v44 }
 0x1c7   :  { %2235 = vmatpush1.bf16.msra.mxu0 %v3851_v46  ;;  %2399 = vmatpush1.bf16.msra.mxu1 %v3854_v47 }
 0x1c8   :  { %2236 = vmatprep.subr.bf16.mxu0 %v3859_v48  ;;  %2400 = vmatprep.subr.bf16.mxu1 %v3862_v49 }
 0x1cb   :  { %2237 = vmatpush1.bf16.msra.mxu0 %v3857_v51  ;;  %2401 = vmatpush1.bf16.msra.mxu1 %v3860_v52 }
 0x1cc   :  { %2238 = vmatprep.subr.bf16.mxu0 %v3865_v53  ;;  %2402 = vmatprep.subr.bf16.mxu1 %v3868_v54 }
 0x1cf   :  { %2239 = vmatpush1.bf16.msra.mxu0 %v3863_v57  ;;  %2403 = vmatpush1.bf16.msra.mxu1 %v3866_v58 }
 0x1d0   :  { %2240 = vmatprep.subr.bf16.mxu0 %v3871_v60  ;;  %2404 = vmatprep.subr.bf16.mxu1 %v3874_v61 }
 0x1d3   :  { %2241 = vmatpush1.bf16.msra.mxu0 %v3869_v63  ;;  %2405 = vmatpush1.bf16.msra.mxu1 %v3872_v1 }
 0x1d4   :  { %3365 = vmatprep.subr.bf16.mxu0 %v3875_v2  ;;  %3387 = vmatprep.subr.bf16.mxu1 %v3876_v3 }
 0x1d6   :  { %2243 = vmatmul.mubr.bf16.vlgmr.msra.gmra.mrb[8].mxu0 %v527_v31  ;;  %2407 = vmatmul.mubr.bf16.vlgmr.msra.gmra.mrb[8].mxu1 %v527_v31 }
 0x1d7   :  { %3366 = vmatpush3.bf16.msra.mxu0 %v3877_v4  ;;  %3388 = vmatpush3.bf16.msra.mxu1 %v3878_v5 }
 0x1d8   :  { %3367 = vmatprep.subr.bf16.mxu0 %v3879_v10  ;;  %3389 = vmatprep.subr.bf16.mxu1 %v3880_v12 }
 0x1db   :  { %3368 = vmatpush3.bf16.msra.mxu0 %v3881_v59  ;;  %3390 = vmatpush3.bf16.msra.mxu1 %v3882_v13 }
 0x1dc   :  { %3369 = vmatprep.subr.bf16.mxu0 %v3883_v14  ;;  %3391 = vmatprep.subr.bf16.mxu1 %v3884_v15 }
 0x1df   :  { %3370 = vmatpush3.bf16.msra.mxu0 %v3885_v16  ;;  %3392 = vmatpush3.bf16.msra.mxu1 %v3886_v18 }
 0x1e0   :  { %3371 = vmatprep.subr.bf16.mxu0 %v3887_v19  ;;  %3393 = vmatprep.subr.bf16.mxu1 %v3888_v20  ;;  %v2882_v20 = vld [vmem:[%s4504_s10] sm:$0xff] }
 0x1e3   :  { %3372 = vmatpush3.bf16.msra.mxu0 %v3889_v22  ;;  %3394 = vmatpush3.bf16.msra.mxu1 %v3890_v23  ;;  %v2883_v22 = vld [vmem:[%s4504_s10 + $0x8] sm:$0xff]  ;;  %v2797_v23 = vld [vmem:[%s4502_s8] sm:$0xff] }
 0x1e4   :  { %3373 = vmatprep.subr.bf16.mxu0 %v3891_v24  ;;  %3395 = vmatprep.subr.bf16.mxu1 %v3892_v25  ;;  %v3448_v24 = vpack.c.bf16 %v2883_v22, %v2882_v20  ;;  %v2798_v25 = vld [vmem:[%s4502_s8 + $0x8] sm:$0xff] }
 0x1e7   :  { %3374 = vmatpush3.bf16.msra.mxu0 %v3893_v26  ;;  %3396 = vmatpush3.bf16.msra.mxu1 %v3894_v27  ;;  %v4035_v26 = vmov 0.0|0.0   ;;  %v3442_v27 = vpack.c.bf16 %v2798_v25, %v2797_v23 }
 0x1e8   :  { %3375 = vmatprep.subr.bf16.mxu0 %v3895_v28  ;;  %3397 = vmatprep.subr.bf16.mxu1 %v3896_v29  ;;  %v2884_v28 = vld [vmem:[%s4504_s10 + $0x10] sm:$0xff]  ;;  %v2885_v29 = vld [vmem:[%s4504_s10 + $0x18] sm:$0xff] }
 0x1eb   :  { %3376 = vmatpush3.bf16.msra.mxu0 %v3897_v30  ;;  %3398 = vmatpush3.bf16.msra.mxu1 %v3898_v32  ;;  %v2799_v30 = vld [vmem:[%s4502_s8 + $0x10] sm:$0xff]  ;;  %v3451_v32 = vpack.c.bf16 %v2885_v29, %v2884_v28 }
 0x1ec   :  { %3377 = vmatprep.subr.bf16.mxu0 %v3899_v8  ;;  %3399 = vmatprep.subr.bf16.mxu1 %v3900_v34  ;;  %v2800_v8 = vld [vmem:[%s4502_s8 + $0x18] sm:$0xff] }
 0x1ed   :  { %v3445_v34 = vpack.c.bf16 %v2800_v8, %v2799_v30 }
 0x1ef   :  { %3378 = vmatpush3.bf16.msra.mxu0 %v3901_v35  ;;  %3400 = vmatpush3.bf16.msra.mxu1 %v3902_v36  ;;  %v4037_v35 = vmov 0.0  }
 0x1f0   :  { %3379 = vmatprep.subr.bf16.mxu0 %v3903_v37  ;;  %3401 = vmatprep.subr.bf16.mxu1 %v3904_v56  ;;  %v3327_v56 = vld [vmem:[%s4501_s7] ss:$0 sm:$0xff] }
 0x1f3   :  { %3380 = vmatpush3.bf16.msra.mxu0 %v3905_v38  ;;  %3402 = vmatpush3.bf16.msra.mxu1 %v3906_v39 }
 0x1f4   :  { %3447 = vmatprep.subr.bf16.mxu1 %v4035_v26  ;;  %3441 = vmatprep.subr.bf16.mxu0 %v4035_v26 }
 0x2a9   :  { %v2244_v43 = vpop.f32.mrb[8].mxu0  ;;  %v2408_v44 = vpop.f32.mrb[8].mxu1 }
 0x2aa   :  { %v3453_v45 = vadd.f32 %v2244_v43, %v790_v21  ;;  %v3455_v46 = vadd.f32 %v2408_v44, %v798_v41  ;;  %v2246_v47 = vpop.f32.mrb[9].mxu0  ;;  %v2410_v48 = vpop.f32.mrb[9].mxu1 }
 0x2ab   :  { %v3454_v49 = vadd.f32 %v2246_v47, %v794_v42  ;;  %v3456_v50 = vadd.f32 %v2410_v48, %v802_v33  ;;  %v2248_v51 = vpop.f32.mrb[10].mxu0  ;;  %v2412_v52 = vpop.f32.mrb[10].mxu1 }
 0x2ac   :  { %v2419_v7 = vmul.f32 1.442695, %v3453_v45  ;;  %v2423_v53 = vmul.f32 1.442695, %v3455_v46  ;;  %v2249_v55 = vpop.f32.mrb[11].mxu0  ;;  %v2413_v9 = vpop.f32.mrb[11].mxu1 }
 0x2ad   :  { %v2421_v54 = vmul.f32 1.442695, %v3454_v49  ;;  %v2425_v17 = vmul.f32 1.442695, %v3456_v50  ;;  %vm2415_vm9 = vcmp.gt.f32.partialorder %v3453_v45, 0.0  ;;  %vm2417_vm10 = vcmp.gt.f32.partialorder %v3455_v46, 0.0 }
 0x2ae   :  { %3923 = vpow2.f32 %v2419_v7  ;;  %vm2416_vm11 = vcmp.gt.f32.partialorder %v3454_v49, 0.0  ;;  %vm2418_vm12 = vcmp.gt.f32.partialorder %v3456_v50, 0.0  ;;  %v3361_v52 = vld [vmem:[%s4503_s9] ss:$0 sm:$0xff] }
 0x2af   :  { %3925 = vpow2.f32 %v2423_v53  ;;  %v3363_v7 = vld [vmem:[%s4505_s11] ss:$0 sm:$0xff] }
 0x2b0   :  { %3927 = vpow2.f32 %v2421_v54 }
 0x2b1   :  { %3929 = vpow2.f32 %v2425_v17 }
 0x2b8   :  { %v3924_v6 = vpop.eup %3923 }
 0x2b9   :  { %v3926_v11 = vpop.eup %3925  ;;  %v3323_v57 = vadd.f32 -1.0, %v3924_v6 }
 0x2ba   :  { %v3928_v58 = vpop.eup %3927  ;;  %v3325_v60 = vadd.f32 -1.0, %v3926_v11 }
 0x2bb   :  { %v3930_v61 = vpop.eup %3929  ;;  %v2431_v62 = vmul.f32 1.6732632, %v3323_v57  ;;  %v3324_v63 = vadd.f32 -1.0, %v3928_v58 }
 0x2bc   :  { %v2433_v1 = vmul.f32 1.6732632, %v3325_v60  ;;  %v3326_v0 = vadd.f32 -1.0, %v3930_v61 }
 0x2bd   :  { %v2435_v2 = vsel %vm2415_vm9, %v3453_v45, %v2431_v62  ;;  %v2432_v3 = vmul.f32 1.6732632, %v3324_v63 }
 0x2be   :  { %v2437_v4 = vsel %vm2417_vm10, %v3455_v46, %v2433_v1  ;;  %v2434_v5 = vmul.f32 1.6732632, %v3326_v0  ;;  %v2439_v31 = vmul.f32 1.050701, %v2435_v2 }
 0x2bf   :  { %v2436_v10 = vsel %vm2416_vm11, %v3454_v49, %v2432_v3  ;;  %v2441_v12 = vmul.f32 1.050701, %v2437_v4 }
 0x2c0   :  { %v2440_v59 = vmul.f32 1.050701, %v2436_v10  ;;  %v2438_v13 = vsel %vm2418_vm12, %v3456_v50, %v2434_v5  ;;  %v2443_v16 = vpack.c.bf16 %v2439_v31, %v2439_v31 }
 0x2c1   :  { %v2442_v14 = vmul.f32 1.050701, %v2438_v13  ;;  %v2445_v19 = vpack.c.bf16 %v2441_v12, %v2441_v12 }
 0x2c2   :  { %v2444_v15 = vpack.c.bf16 %v2440_v59, %v2440_v59 }
 0x2c3   :  { %v2446_v18 = vpack.c.bf16 %v2442_v14, %v2442_v14 }
 0x2c4   :  { %2742 = vmatprep.mubr.bf16.mxu0 %v2444_v15 }
 0x2c5   :  { %2782 = vmatprep.mubr.bf16.mxu1 %v2446_v18  ;;  %2743 = vmatmul.mubr.bf16.vlgmr.msra.gmra.mrb[12].mxu0 %v2443_v16 }
 0x2c6   :  { %2783 = vmatmul.mubr.bf16.vlgmr.msra.gmra.mrb[12].mxu1 %v2445_v19  ;;  %3443 = vmatpush3.bf16.msra.mxu0 %v3442_v27 }
 0x2c7   :  { %3449 = vmatpush3.bf16.msra.mxu1 %v3448_v24  ;;  %3444 = vmatprep.subr.bf16.mxu0 %v4035_v26 }
 0x2c8   :  { %3450 = vmatprep.subr.bf16.mxu1 %v4035_v26  ;;  %3427 = vmatprep.mubr.msk.f32.mxu0 %vm4036_vm13, %v4037_v35 }
 0x2c9   :  { %3438 = vmatprep.mubr.msk.f32.mxu1 %vm4036_vm13, %v4037_v35 }
 0x2ca   :  { %3446 = vmatpush3.bf16.msra.mxu0 %v3445_v34 }
 0x2cb   :  { %3452 = vmatpush3.bf16.msra.mxu1 %v3451_v32 }
 0x398   :  { %v3381_v36 = vpop.f32.mrb[12].mxu0 }
 0x399   :  { %v3403_v37 = vpop.f32.mrb[12].mxu1  ;;  %v3382_v38 = vpop.f32.mrb[13].mxu0 }
 0x39a   :  { %v3383_v39 = vadd.f32 %v3382_v38, %v3381_v36  ;;  %v3404_v40 = vpop.f32.mrb[13].mxu1  ;;  %v3384_v21 = vpop.f32.mrb[14].mxu0 }
 0x39b   :  { %v3405_v41 = vadd.f32 %v3404_v40, %v3403_v37  ;;  %v3406_v42 = vpop.f32.mrb[14].mxu1  ;;  %v3385_v33 = vpop.f32.mrb[15].mxu0 }
 0x39c   :  { %v2745_v43 = vadd.f32 %v3383_v39, %v3327_v56  ;;  %v3407_v44 = vpop.f32.mrb[15].mxu1 }
 0x39e   :  { %v2785_v45 = vadd.f32 %v3405_v41, %v2745_v43 }
 0x3a0   :  { %v2791_v46 = vmul.f32 1.442695, %v2785_v45  ;;  %vm2790_vm14 = vcmp.gt.f32.partialorder %v2785_v45, 0.0 }
 0x3a2   :  { %3931 = vpow2.f32 %v2791_v46 }
 0x3ac   :  { %v3932_v47 = vpop.eup %3931 }
 0x3ad   :  { %v3360_v48 = vadd.f32 -1.0, %v3932_v47 }
 0x3af   :  { %v2794_v49 = vmul.f32 1.6732632, %v3360_v48 }
 0x3b1   :  { %v2795_v50 = vsel %vm2790_vm14, %v2785_v45, %v2794_v49 }
 0x3b2   :  { %v2796_v51 = vmul.f32 1.050701, %v2795_v50 }
 0x3b4   :  { %3428 = vmatmul.mubr.msk.f32.vlgmr.msra.gmra.mrb[16].mxu0 %vm2808_vm15, %v2796_v51  ;;  %3439 = vmatmul.mubr.msk.f32.vlgmr.msra.gmra.mrb[16].mxu1 %vm2808_vm15, %v2796_v51 }
 0x487   :  { %v2878_v53 = vpop.f32.mrb[16].mxu0  ;;  %v2959_v54 = vpop.f32.mrb[16].mxu1 }
 0x488   :  { %v2879_v17 = vadd.f32 %v3361_v52, %v2878_v53  ;;  %v2960_v55 = vadd.f32 %v3363_v7, %v2959_v54  ;;  %v3429_v9 = vpop.f32.mrb[17].mxu0  ;;  %v3440_v6 = vpop.f32.mrb[17].mxu1 }
 0x48a   :  { %v2963_v11 = vmax.f32 %v2960_v55, -17.0  ;;  %2968 = vst.msk [vmem:[#allocation5] sm:$0xff] %vm2967_vm0, %v2879_v17 }
 0x48b   :  { %3970 = shalt.err (!%p3967_p12)
}
 0x48c   :  { %s3971_s5 = scalar_lea.hbm %s4506_s12, 128 }
 0x48d   :  { %p3972_p13 = scmp.ne.s32.totalorder %s4506_s12, %s3971_s5  ;;  %p3975_p0 = scmp.lt.u32.totalorder %s3971_s5, %s4506_s12 }
 0x48f   :  { %p3977_p1 = pnand %p3975_p0, %p3972_p13 }
 0x491   :  { %3980 = shalt.err (!%p3977_p1)
}
 0x492   :  { %2990 = dma.vmem_to_hbm [thread:$0]  %s2988_s27, 128, %s4506_s12, [#allocation4]   ;;  %v2964_v57 = vmin.f32 %v2963_v11, 10.0 }
 0x493   :  { %s4039_s30 = smov [#allocation6]  }
 0x494   :  { %v2965_v58 = vmul.f32 1.442695, %v2964_v57  ;;  %s2997_s18 = sshll.u32 %s4039_s30, 4  ;;  %s2998_s18 = int_to_ptr.vmem [resolvable:$true] %s2997_s18 }
 0x495   :  { %s3981_s19 = scalar_lea.vmem %s2998_s18, 128  ;;  %p3986_p3 = scmp.lt.s32.totalorder %s2998_s18, %s2998_s18 }
 0x496   :  { %3933 = vpow2.f32 %v2965_v58  ;;  %p3982_p2 = scmp.ne.s32.totalorder %s2998_s18, %s3981_s19  ;;  %p3987_p4 = scmp.lt.s32.totalorder %s3981_s19, %s3981_s19 }
 0x498   :  { %p3988_p5 = por %p3987_p4, %p3986_p3 }
 0x49a   :  { %p3989_p6 = pnand %p3988_p5, %p3982_p2 }
 0x4a0   :  { %v3934_v60 = vpop.eup %3933 }
 0x4a1   :  { %2969 = vst.msk [vmem:[#allocation6] sm:$0xff] %vm2967_vm0, %v3934_v60  ;;  %3935 = vrsqrt.f32 %v3934_v60 }
 0x4a2   :  { %3992 = shalt.err (!%p3989_p6)
}
 0x4a3   :  { %s3993_s12 = scalar_lea.hbm %s4507_s13, 128 }
 0x4a4   :  { %p3994_p7 = scmp.ne.s32.totalorder %s4507_s13, %s3993_s12  ;;  %p3997_p8 = scmp.lt.u32.totalorder %s3993_s12, %s4507_s13 }
 0x4a6   :  { %p3999_p9 = pnand %p3997_p8, %p3994_p7 }
 0x4a8   :  { %4002 = shalt.err (!%p3999_p9)
}
 0x4a9   :  { %3000 = dma.vmem_to_hbm [thread:$0]  %s2998_s18, 128, %s4507_s13, [#allocation7]   ;;  %vm2972_vm1 = vcmp.eq.f32.partialorder %v3934_v60, inf  ;;  %v2975_v63 = vand.u32 2147483648, %v3934_v60  ;;  %v2977_v1 = vld [vmem:[%s4495_s1] sm:$0xff]  ;;  %vm2974_vm2 = vcmp.eq.f32.partialorder %v3934_v60, 0.0 }
 0x4aa   :  { %s4040_s24 = smov [#allocation8]  }
 0x4ab   :  { %v3936_v61 = vpop.eup %3935  ;;  %s3007_s25 = sshll.u32 %s4040_s24, 4  ;;  %s3008_s25 = int_to_ptr.vmem [resolvable:$true] %s3007_s25 }
 0x4ac   :  { %v2971_v62 = vmul.f32 %v3936_v61, %v3934_v60  ;;  %s4003_s26 = scalar_lea.vmem %s3008_s25, 128  ;;  %p4008_p11 = scmp.lt.s32.totalorder %s3008_s25, %s3008_s25 }
 0x4ad   :  { %p4004_p10 = scmp.ne.s32.totalorder %s3008_s25, %s4003_s26  ;;  %p4009_p12 = scmp.lt.s32.totalorder %s4003_s26, %s4003_s26 }
 0x4ae   :  { %v2973_v0 = vsel %vm2972_vm1, %v3934_v60, %v2971_v62 }
 0x4af   :  { %v2976_v2 = vsel %vm2974_vm2, %v2975_v63, %v2973_v0  ;;  %p4010_p13 = por %p4009_p12, %p4008_p11 }
 0x4b0   :  { %v2978_v3 = vmul.f32 %v2977_v1, %v2976_v2 }
 0x4b1   :  { %p4011_p0 = pnand %p4010_p13, %p4004_p10 }
 0x4b2   :  { %v2979_v4 = vadd.f32 %v2978_v3, %v2879_v17 }
 0x4b4   :  { %2980 = vst.msk [vmem:[#allocation8] sm:$0xff] %vm2967_vm0, %v2979_v4 }
 0x4b5   :  { %4014 = shalt.err (!%p4011_p0)
}
 0x4b6   :  { %s4015_s1 = scalar_lea.hbm %s4508_s14, 128 }
 0x4b7   :  { %p4016_p1 = scmp.ne.s32.totalorder %s4508_s14, %s4015_s1  ;;  %p4019_p2 = scmp.lt.u32.totalorder %s4015_s1, %s4508_s14 }
 0x4b9   :  { %p4021_p3 = pnand %p4019_p2, %p4016_p1 }
 0x4bb   :  { %4024 = shalt.err (!%p4021_p3)
}
 0x4bc   :  { %3010 = dma.vmem_to_hbm [thread:$0]  %s3008_s25, 128, %s4508_s14, [#allocation7]  }
 0x4bd   :  { %4027 = dma.done.wait [#allocation4], 128  }
 0x4be   :  { %4028 = vsyncadd [#allocation4], 4294967168 }
 0x4bf   :  { %4029 = dma.done.wait [#allocation7], 256  }
 0x4c0   :  { %4030 = vsyncadd [#allocation7], 4294967040 }
 0x4c1   :  { %3020 = vsyncpa [#allocation3], 1 }
 0x4c2   :  { %3021 = vsyncpa [#allocation4], 1 }
 0x4c3   :  { %3022 = vsyncpa [#allocation7], 1 }

</bundles_post_ra>
